<compile_context>
chip_gen: v6e
topology: v6e:2x2x1
jax: 0.10.0
libtpu: 0.0.40
codegen_flags: <defaults>
</compile_context>

<pallas_src>
import functools
import math

import jax
import jax.numpy as jnp
from jax.experimental import pallas as pl
from jax.experimental.pallas import tpu as pltpu


# ----------------------------------------------------------------------------
# helpers
# ----------------------------------------------------------------------------
def _pick_tile(dim, candidates):
    """Largest candidate tile that evenly divides `dim`; else the full dim."""
    for c in candidates:
        if c <= dim and dim % c == 0:
            return c
    return dim


# ----------------------------------------------------------------------------
# Fused (LayerNorm) + Linear:  y = [LN](x) @ W (+ bias) (+ ReLU) (+ residual)
#   W is supplied pre-transposed, layout (K, N), so the kernel is a plain
#   row-major contraction (no weight-tile transpose per K step).
# ----------------------------------------------------------------------------
def _make_linear_kernel(*, has_ln, has_bias, apply_relu, has_residual,
                        nk, use_scratch, eps):
    def kernel(*refs):
        it = iter(refs)
        x_ref = next(it)
        w_ref = next(it)
        ga_ref = next(it) if has_ln else None
        gb_ref = next(it) if has_ln else None
        b_ref = next(it) if has_bias else None
        r_ref = next(it) if has_residual else None
        o_ref = next(it)
        acc_ref = next(it) if use_scratch else None

        x = x_ref[...]
        if has_ln:
            # torch-style LayerNorm: unbiased std, eps added to std.
            xf = x.astype(jnp.float32)
            d = xf.shape[-1]
            mean = jnp.mean(xf, axis=-1, keepdims=True)
            diff = xf - mean
            var = jnp.sum(diff * diff, axis=-1, keepdims=True) * (1.0 / (d - 1))
            x = (ga_ref[...].astype(jnp.float32) * diff / (jnp.sqrt(var) + eps)
                 + gb_ref[...].astype(jnp.float32))

        contrib = jnp.dot(x, w_ref[...], preferred_element_type=jnp.float32)

        def epilogue(acc):
            out = acc
            if has_bias:
                out = out + b_ref[...].astype(jnp.float32)
            if apply_relu:
                out = jnp.maximum(out, 0.0)
            if has_residual:
                out = out + r_ref[...].astype(jnp.float32)
            return out.astype(o_ref.dtype)

        if nk == 1:
            # Single K tile: compute + epilogue + store in one shot, no scratch.
            o_ref[...] = epilogue(contrib)
        else:
            acc = acc_ref if use_scratch else o_ref   # f32 output: accumulate in place
            kk = pl.program_id(2)

            @pl.when(kk == 0)
            def _():
                acc[...] = contrib.astype(acc.dtype)

            @pl.when(kk > 0)
            def _():
                acc[...] += contrib.astype(acc.dtype)

            @pl.when(kk == nk - 1)
            def _():
                o_ref[...] = epilogue(acc[...].astype(jnp.float32))

    return kernel


def pallas_linear(x2d, w_kn, bias=None, *, residual=None, apply_relu=False,
                  ln=None, ln_eps=1e-6):
    """x2d: (M, K); w_kn: (K, N) (already transposed from torch's (N, K));
    bias: (N,) or None; residual: (M, N) or None;
    ln: optional (alpha, beta) over the K features, fused as a prologue."""
    M, K = x2d.shape
    K2, N = w_kn.shape
    assert K == K2

    if ln is not None and K > 2048:
        # Fused LN needs the whole feature dim in one K tile; fall back.
        x2d = pallas_layer_norm(x2d, ln[0], ln[1], ln_eps)
        ln = None

    tm = _pick_tile(M, (512, 256, 128, 64, 32, 16, 8))
    tn = _pick_tile(N, (512, 384, 256, 128))
    tk = K if ln is not None else _pick_tile(K, (1024, 512, 256, 128))
    grid = (M // tm, N // tn, K // tk)
    nk = grid[2]
    use_scratch = (nk > 1) and (x2d.dtype != jnp.float32)

    in_specs = [
        pl.BlockSpec((tm, tk), lambda i, j, k: (i, k)),
        pl.BlockSpec((tk, tn), lambda i, j, k: (k, j)),
    ]
    inputs = [x2d, w_kn]
    if ln is not None:
        in_specs += [pl.BlockSpec((1, tk), lambda i, j, k: (0, k)),
                     pl.BlockSpec((1, tk), lambda i, j, k: (0, k))]
        inputs += [ln[0].reshape(1, K), ln[1].reshape(1, K)]
    if bias is not None:
        in_specs.append(pl.BlockSpec((1, tn), lambda i, j, k: (0, j)))
        inputs.append(bias.reshape(1, N))
    if residual is not None:
        in_specs.append(pl.BlockSpec((tm, tn), lambda i, j, k: (i, j)))
        inputs.append(residual)

    kernel = _make_linear_kernel(
        has_ln=ln is not None, has_bias=bias is not None,
        apply_relu=apply_relu, has_residual=residual is not None,
        nk=nk, use_scratch=use_scratch, eps=ln_eps)

    itemsize = x2d.dtype.itemsize
    cost = pl.CostEstimate(
        flops=2 * M * N * K, transcendentals=0,
        bytes_accessed=(M * K + K * N + M * N
                        + (M * N if residual is not None else 0)) * itemsize)

    scratch_shapes = [pltpu.VMEM((tm, tn), jnp.float32)] if use_scratch else []

    return pl.pallas_call(
        kernel,
        out_shape=jax.ShapeDtypeStruct((M, N), x2d.dtype),
        grid_spec=pltpu.PrefetchScalarGridSpec(
            num_scalar_prefetch=0,
            grid=grid,
            in_specs=in_specs,
            out_specs=pl.BlockSpec((tm, tn), lambda i, j, k: (i, j)),
            scratch_shapes=scratch_shapes),
        compiler_params=pltpu.CompilerParams(
            dimension_semantics=("parallel", "parallel", "arbitrary")),
        cost_estimate=cost,
    )(*inputs)


# ----------------------------------------------------------------------------
# Standalone LayerNorm (fallback only — normally fused into the next matmul)
# ----------------------------------------------------------------------------
def _layernorm_kernel(x_ref, a_ref, b_ref, o_ref, *, eps):
    x = x_ref[...].astype(jnp.float32)
    d = x.shape[-1]
    mean = jnp.mean(x, axis=-1, keepdims=True)
    diff = x - mean
    var = jnp.sum(diff * diff, axis=-1, keepdims=True) * (1.0 / (d - 1))  # unbiased
    y = (a_ref[...].astype(jnp.float32) * diff / (jnp.sqrt(var) + eps)
         + b_ref[...].astype(jnp.float32))
    o_ref[...] = y.astype(o_ref.dtype)


def pallas_layer_norm(x2d, alpha, beta, eps=1e-6):
    M, D = x2d.shape
    tm = _pick_tile(M, (512, 256, 128, 64, 32, 16, 8))
    kernel = functools.partial(_layernorm_kernel, eps=eps)
    return pl.pallas_call(
        kernel,
        out_shape=jax.ShapeDtypeStruct((M, D), x2d.dtype),
        grid_spec=pltpu.PrefetchScalarGridSpec(
            num_scalar_prefetch=0,
            grid=(M // tm,),
            in_specs=[pl.BlockSpec((tm, D), lambda i: (i, 0)),
                      pl.BlockSpec((1, D), lambda i: (0, 0)),
                      pl.BlockSpec((1, D), lambda i: (0, 0))],
            out_specs=pl.BlockSpec((tm, D), lambda i: (i, 0))),
        compiler_params=pltpu.CompilerParams(dimension_semantics=("parallel",)),
    )(x2d, alpha.reshape(1, D), beta.reshape(1, D))


# ----------------------------------------------------------------------------
# Multi-head scaled dot-product attention: all heads per grid step, merged
# (Sq, D) lane-dense output, no head transposes anywhere.
# ----------------------------------------------------------------------------
def _attention_kernel(*refs, h, scale, has_mask, fused_qkv):
    it = iter(refs)
    if fused_qkv:
        src_ref = next(it)      # (Sq, 3D) = [Q | K | V]
        q_ref = src_ref
    else:
        q_ref = next(it)        # (Sq, D)
        src_ref = next(it)      # (Sk, 2D) = [K | V]
    m_ref = next(it) if has_mask else None
    o_ref = next(it)            # (Sq, D)

    Sq, D = o_ref.shape
    dk = D // h
    k_off = D if fused_qkv else 0
    v_off = 2 * D if fused_qkv else D

    q_all = q_ref[...].astype(jnp.float32)
    src = q_all if fused_qkv else src_ref[...].astype(jnp.float32)
    m_all = m_ref[...] if has_mask else None            # (Hm, Sqm, Sk) ints

    outs = []
    for hd in range(h):
        qh = q_all[:, hd * dk:(hd + 1) * dk]                       # (Sq, dk)
        kh = src[:, k_off + hd * dk:k_off + (hd + 1) * dk]         # (Sk, dk)
        vh = src[:, v_off + hd * dk:v_off + (hd + 1) * dk]         # (Sk, dk)
        s = jax.lax.dot_general(qh, kh, (((1,), (1,)), ((), ())),
                                preferred_element_type=jnp.float32) * scale
        if has_mask:
            hm = m_all.shape[0]
            mh = m_all[min(hd, hm - 1)]                            # per-head or broadcast
            s = jnp.where(mh == 0, -1e9, s)
        mmax = jnp.max(s, axis=-1, keepdims=True)
        p = jnp.exp(s - mmax)
        att = p * pl.reciprocal(jnp.sum(p, axis=-1, keepdims=True), approx=True)
        outs.append(jnp.dot(att, vh, preferred_element_type=jnp.float32))
    o_ref[...] = jnp.concatenate(outs, axis=-1).astype(o_ref.dtype)


def pallas_attention(q, kv, mask, h):
    """q: (B, Sq, 3D) fused [Q|K|V] when kv is None (self-attn), else (B, Sq, D).
    kv: None, or (B, Sk, 2D) fused [K|V] (cross-attn).
    mask: None or broadcastable int array (..., Sq or 1, Sk).  Returns (B, Sq, D)."""
    fused_qkv = kv is None
    B, Sq, qw = q.shape
    D = qw // 3 if fused_qkv else qw
    Sk = Sq if fused_qkv else kv.shape[1]
    dk = D // h
    scale = 1.0 / math.sqrt(dk)

    inputs = [q]
    in_specs = [pl.BlockSpec((None, Sq, qw), lambda b: (b, 0, 0))]
    if not fused_qkv:
        inputs.append(kv)
        in_specs.append(pl.BlockSpec((None, Sk, 2 * D), lambda b: (b, 0, 0)))

    has_mask = mask is not None
    if has_mask:
        m = jnp.asarray(mask)
        if m.ndim == 2:
            m = m[None, None]
        elif m.ndim == 3:
            m = m[:, None]
        Bm, Hm, Sqm, Skm = m.shape
        assert Skm == Sk
        m_map = (lambda b: (0, 0, 0, 0)) if Bm == 1 else (lambda b: (b, 0, 0, 0))
        in_specs.append(pl.BlockSpec((None, Hm, Sqm, Skm), m_map))
        inputs.append(m)

    kernel = functools.partial(_attention_kernel, h=h, scale=scale,
                               has_mask=has_mask, fused_qkv=fused_qkv)
    return pl.pallas_call(
        kernel,
        out_shape=jax.ShapeDtypeStruct((B, Sq, D), q.dtype),
        grid_spec=pltpu.PrefetchScalarGridSpec(
            num_scalar_prefetch=0,
            grid=(B,),
            in_specs=in_specs,
            out_specs=pl.BlockSpec((None, Sq, D), lambda b: (b, 0, 0))),
        compiler_params=pltpu.CompilerParams(dimension_semantics=("parallel",)),
    )(*inputs)


# ----------------------------------------------------------------------------
# DecoderBlock.forward
# ----------------------------------------------------------------------------
def decoder_block_forward(x, encoder_output, src_mask, tgt_mask, p, h, eps=1e-6):
    B, St, D = x.shape
    Ss = encoder_output.shape[1]
    x2d = x.reshape(B * St, D)
    enc2d = encoder_output.reshape(B * Ss, D)

    # ---- Residual 0: self-attention on LN(x) -------------------------------
    # LN fused into the single fused-QKV projection; all heads handled in one
    # attention kernel; residual add fused into the w_o projection.
    w_qkv = jnp.concatenate([p["sa_wq"].T, p["sa_wk"].T, p["sa_wv"].T], axis=1)  # (D, 3D)
    qkv = pallas_linear(x2d, w_qkv, ln=(p["ln0_alpha"], p["ln0_bias"]), ln_eps=eps)
    att = pallas_attention(qkv.reshape(B, St, 3 * D), None, tgt_mask, h)
    x2d = pallas_linear(att.reshape(B * St, D), p["sa_wo"].T, residual=x2d)

    # ---- Residual 1: cross-attention (q from LN(x), k/v from encoder) ------
    w_kv = jnp.concatenate([p["ca_wk"].T, p["ca_wv"].T], axis=1)                 # (D, 2D)
    qc = pallas_linear(x2d, p["ca_wq"].T, ln=(p["ln1_alpha"], p["ln1_bias"]), ln_eps=eps)
    kvc = pallas_linear(enc2d, w_kv)
    att = pallas_attention(qc.reshape(B, St, D), kvc.reshape(B, Ss, 2 * D), src_mask, h)
    x2d = pallas_linear(att.reshape(B * St, D), p["ca_wo"].T, residual=x2d)

    # ---- Residual 2: feed-forward (LN + ReLU fused in W1, residual in W2) ---
    f = pallas_linear(x2d, p["ff_w1"].T, p["ff_b1"], apply_relu=True,
                      ln=(p["ln2_alpha"], p["ln2_bias"]), ln_eps=eps)
    x2d = pallas_linear(f, p["ff_w2"].T, p["ff_b2"], residual=x2d)
    return x2d.reshape(B, St, D)


# ----------------------------------------------------------------------------
# Pure-JAX reference (mirrors the PyTorch module in eval mode)
# ----------------------------------------------------------------------------
def _ref_layernorm(x, alpha, bias, eps=1e-6):
    mean = jnp.mean(x, axis=-1, keepdims=True)
    std = jnp.std(x, axis=-1, keepdims=True, ddof=1)
    return alpha * (x - mean) / (std + eps) + bias


def _ref_mha(q_in, k_in, v_in, mask, wq, wk, wv, wo, h):
    B, Sq, D = q_in.shape
    Sk = k_in.shape[1]
    dk = D // h
    q = (q_in @ wq.T).reshape(B, Sq, h, dk).transpose(0, 2, 1, 3)
    k = (k_in @ wk.T).reshape(B, Sk, h, dk).transpose(0, 2, 1, 3)
    v = (v_in @ wv.T).reshape(B, Sk, h, dk).transpose(0, 2, 1, 3)
    s = jnp.einsum("bhqd,bhkd->bhqk", q, k) / math.sqrt(dk)
    if mask is not None:
        s = jnp.where(mask == 0, -1e9, s)
    a = jax.nn.softmax(s, axis=-1)
    o = jnp.einsum("bhqk,bhkd->bhqd", a, v)
    o = o.transpose(0, 2, 1, 3).reshape(B, Sq, D)
    return o @ wo.T


def _ref_decoder_block(x, enc, src_mask, tgt_mask, p, h):
    n = _ref_layernorm(x, p["ln0_alpha"], p["ln0_bias"])
    x = x + _ref_mha(n, n, n, tgt_mask, p["sa_wq"], p["sa_wk"], p["sa_wv"], p["sa_wo"], h)
    n = _ref_layernorm(x, p["ln1_alpha"], p["ln1_bias"])
    x = x + _ref_mha(n, enc, enc, src_mask, p["ca_wq"], p["ca_wk"], p["ca_wv"], p["ca_wo"], h)
    n = _ref_layernorm(x, p["ln2_alpha"], p["ln2_bias"])
    f = jnp.maximum(n @ p["ff_w1"].T + p["ff_b1"], 0.0)
    return x + f @ p["ff_w2"].T + p["ff_b2"]


# ----------------------------------------------------------------------------
# main
# ----------------------------------------------------------------------------
if __name__ == "__main__":
    B, St, Ss, D, H, DFF = 2, 8, 8, 64, 4, 128

    key = jax.random.PRNGKey(0)
    ks = jax.random.split(key, 24)

    x = jax.random.normal(ks[0], (B, St, D), jnp.float32)
    enc = jax.random.normal(ks[1], (B, Ss, D), jnp.float32)
    tgt_mask = jnp.tril(jnp.ones((St, St), jnp.int32)).reshape(1, 1, St, St)  # causal
    src_mask = jnp.ones((B, 1, 1, Ss), jnp.int32)

    def w(k, n, m):
        return 0.05 * jax.random.normal(k, (n, m), jnp.float32)

    params = {
        "ln0_alpha": 1.0 + 0.1 * jax.random.normal(ks[2], (D,), jnp.float32),
        "ln0_bias": 0.1 * jax.random.normal(ks[3], (D,), jnp.float32),
        "ln1_alpha": 1.0 + 0.1 * jax.random.normal(ks[4], (D,), jnp.float32),
        "ln1_bias": 0.1 * jax.random.normal(ks[5], (D,), jnp.float32),
        "ln2_alpha": 1.0 + 0.1 * jax.random.normal(ks[6], (D,), jnp.float32),
        "ln2_bias": 0.1 * jax.random.normal(ks[7], (D,), jnp.float32),
        "sa_wq": w(ks[8], D, D), "sa_wk": w(ks[9], D, D),
        "sa_wv": w(ks[10], D, D), "sa_wo": w(ks[11], D, D),
        "ca_wq": w(ks[12], D, D), "ca_wk": w(ks[13], D, D),
        "ca_wv": w(ks[14], D, D), "ca_wo": w(ks[15], D, D),
        "ff_w1": w(ks[16], DFF, D), "ff_b1": 0.05 * jax.random.normal(ks[17], (DFF,), jnp.float32),
        "ff_w2": w(ks[18], D, DFF), "ff_b2": 0.05 * jax.random.normal(ks[19], (D,), jnp.float32),
    }

    fwd = jax.jit(decoder_block_forward, static_argnames=("h",))
    y = fwd(x, enc, src_mask, tgt_mask, params, h=H)
    jax.block_until_ready(y)

    y_ref = _ref_decoder_block(x, enc, src_mask, tgt_mask, params, H)
    assert y.shape == (B, St, D)
    err = float(jnp.max(jnp.abs(y - y_ref)))
    # tolerance leaves margin for the EUP approximate reciprocal in softmax
    assert jnp.allclose(y, y_ref, atol=2e-3, rtol=2e-3), err

    print("KERNEL_OK")
</pallas_src>

<mosaic_0001>
module attributes {stable_mosaic.version = 11 : i64} {
  func.func @kernel(%arg0: i32, %arg1: i32, %arg2: i32, %arg3: memref<16x64xf32, #tpu.memory_space<vmem>>, %arg4: memref<64x192xf32, #tpu.memory_space<vmem>>, %arg5: memref<1x64xf32, #tpu.memory_space<vmem>>, %arg6: memref<1x64xf32, #tpu.memory_space<vmem>>, %arg7: memref<16x192xf32, #tpu.memory_space<vmem>>) attributes {dimension_semantics = [#tpu.dimension_semantics<parallel>, #tpu.dimension_semantics<parallel>, #tpu.dimension_semantics<arbitrary>], iteration_bounds = array<i64: 1, 1, 1>, scalar_prefetch = 0 : i64, scratch_operands = 0 : i64, tpu.core_type = #tpu.core_type<tc>, window_params = [{transform_indices = @transform_0, window_bounds = array<i64: 16, 64>}, {transform_indices = @transform_1, window_bounds = array<i64: 64, 192>}, {transform_indices = @transform_2, window_bounds = array<i64: 1, 64>}, {transform_indices = @transform_3, window_bounds = array<i64: 1, 64>}, {transform_indices = @transform_4, window_bounds = array<i64: 16, 192>}]} {
    %c0 = arith.constant 0 : index
    %c0_0 = arith.constant 0 : index
    %0 = vector.load %arg3[%c0, %c0_0] : memref<16x64xf32, #tpu.memory_space<vmem>>, vector<16x64xf32>
    %cst = arith.constant dense<0.000000e+00> : vector<16xf32>
    %1 = vector.multi_reduction <add>, %0, %cst [1] : vector<16x64xf32> to vector<16xf32>
    %2 = vector.shape_cast %1 : vector<16xf32> to vector<16x1xf32>
    %cst_1 = arith.constant 6.400000e+01 : f32
    %3 = vector.broadcast %cst_1 : f32 to vector<16x1xf32>
    %4 = arith.divf %2, %3 : vector<16x1xf32>
    %5 = vector.broadcast %4 : vector<16x1xf32> to vector<16x64xf32>
    %6 = arith.subf %0, %5 : vector<16x64xf32>
    %7 = arith.mulf %6, %6 : vector<16x64xf32>
    %cst_2 = arith.constant dense<0.000000e+00> : vector<16xf32>
    %8 = vector.multi_reduction <add>, %7, %cst_2 [1] : vector<16x64xf32> to vector<16xf32>
    %9 = vector.shape_cast %8 : vector<16xf32> to vector<16x1xf32>
    %cst_3 = arith.constant 0.0158730168 : f32
    %10 = vector.broadcast %cst_3 : f32 to vector<16x1xf32>
    %11 = arith.mulf %9, %10 : vector<16x1xf32>
    %c0_4 = arith.constant 0 : index
    %c0_5 = arith.constant 0 : index
    %12 = vector.load %arg5[%c0_4, %c0_5] : memref<1x64xf32, #tpu.memory_space<vmem>>, vector<1x64xf32>
    %13 = vector.broadcast %12 : vector<1x64xf32> to vector<16x64xf32>
    %14 = arith.mulf %13, %6 : vector<16x64xf32>
    %15 = math.sqrt %11 : vector<16x1xf32>
    %cst_6 = arith.constant 9.99999997E-7 : f32
    %16 = vector.broadcast %cst_6 : f32 to vector<16x1xf32>
    %17 = arith.addf %15, %16 : vector<16x1xf32>
    %18 = vector.broadcast %17 : vector<16x1xf32> to vector<16x64xf32>
    %19 = arith.divf %14, %18 : vector<16x64xf32>
    %c0_7 = arith.constant 0 : index
    %c0_8 = arith.constant 0 : index
    %20 = vector.load %arg6[%c0_7, %c0_8] : memref<1x64xf32, #tpu.memory_space<vmem>>, vector<1x64xf32>
    %21 = vector.broadcast %20 : vector<1x64xf32> to vector<16x64xf32>
    %22 = arith.addf %19, %21 : vector<16x64xf32>
    %c0_9 = arith.constant 0 : index
    %c0_10 = arith.constant 0 : index
    %23 = vector.load %arg4[%c0_9, %c0_10] : memref<64x192xf32, #tpu.memory_space<vmem>>, vector<64x192xf32>
    %cst_11 = arith.constant dense<0.000000e+00> : vector<16x192xf32>
    %24 = tpu.matmul %22, %23, %cst_11 {dimension_numbers = #tpu.dot_dimension_numbers<[1], [0], [0], [1], [0, 0, 1, 1], [], []>} : vector<16x64xf32>, vector<64x192xf32>, vector<16x192xf32> -> vector<16x192xf32>
    %c0_12 = arith.constant 0 : index
    %c0_13 = arith.constant 0 : index
    %25 = vector.load %arg7[%c0_12, %c0_13] : memref<16x192xf32, #tpu.memory_space<vmem>>, vector<16x192xf32>
    tpu.vector_store %arg7[%c0_12, %c0_13], %24 {strides = array<i32>} : memref<16x192xf32, #tpu.memory_space<vmem>>, vector<16x192xf32>,
    return
  }
  func.func @transform_0(%arg0: i32, %arg1: i32, %arg2: i32) -> (i32, i32) {
    %c0_i32 = arith.constant 0 : i32
    return %arg0, %arg2 : i32, i32
  }
  func.func @transform_1(%arg0: i32, %arg1: i32, %arg2: i32) -> (i32, i32) {
    %c0_i32 = arith.constant 0 : i32
    return %arg2, %arg1 : i32, i32
  }
  func.func @transform_2(%arg0: i32, %arg1: i32, %arg2: i32) -> (i32, i32) {
    %c0_i32 = arith.constant 0 : i32
    %c0_i32_0 = arith.constant 0 : i32
    return %c0_i32, %arg2 : i32, i32
  }
  func.func @transform_3(%arg0: i32, %arg1: i32, %arg2: i32) -> (i32, i32) {
    %c0_i32 = arith.constant 0 : i32
    %c0_i32_0 = arith.constant 0 : i32
    return %c0_i32, %arg2 : i32, i32
  }
  func.func @transform_4(%arg0: i32, %arg1: i32, %arg2: i32) -> (i32, i32) {
    %c0_i32 = arith.constant 0 : i32
    return %arg0, %arg1 : i32, i32
  }
}

module attributes {stable_mosaic.version = 11 : i64} {
  func.func @kernel(%arg0: i32, %arg1: i32, %arg2: i32, %arg3: memref<16x64xf32, #tpu.memory_space<vmem>>, %arg4: memref<64x64xf32, #tpu.memory_space<vmem>>, %arg5: memref<1x64xf32, #tpu.memory_space<vmem>>, %arg6: memref<1x64xf32, #tpu.memory_space<vmem>>, %arg7: memref<16x64xf32, #tpu.memory_space<vmem>>) attributes {dimension_semantics = [#tpu.dimension_semantics<parallel>, #tpu.dimension_semantics<parallel>, #tpu.dimension_semantics<arbitrary>], iteration_bounds = array<i64: 1, 1, 1>, scalar_prefetch = 0 : i64, scratch_operands = 0 : i64, tpu.core_type = #tpu.core_type<tc>, window_params = [{transform_indices = @transform_0, window_bounds = array<i64: 16, 64>}, {transform_indices = @transform_1, window_bounds = array<i64: 64, 64>}, {transform_indices = @transform_2, window_bounds = array<i64: 1, 64>}, {transform_indices = @transform_3, window_bounds = array<i64: 1, 64>}, {transform_indices = @transform_4, window_bounds = array<i64: 16, 64>}]} {
    %c0 = arith.constant 0 : index
    %c0_0 = arith.constant 0 : index
    %0 = vector.load %arg3[%c0, %c0_0] : memref<16x64xf32, #tpu.memory_space<vmem>>, vector<16x64xf32>
    %cst = arith.constant dense<0.000000e+00> : vector<16xf32>
    %1 = vector.multi_reduction <add>, %0, %cst [1] : vector<16x64xf32> to vector<16xf32>
    %2 = vector.shape_cast %1 : vector<16xf32> to vector<16x1xf32>
    %cst_1 = arith.constant 6.400000e+01 : f32
    %3 = vector.broadcast %cst_1 : f32 to vector<16x1xf32>
    %4 = arith.divf %2, %3 : vector<16x1xf32>
    %5 = vector.broadcast %4 : vector<16x1xf32> to vector<16x64xf32>
    %6 = arith.subf %0, %5 : vector<16x64xf32>
    %7 = arith.mulf %6, %6 : vector<16x64xf32>
    %cst_2 = arith.constant dense<0.000000e+00> : vector<16xf32>
    %8 = vector.multi_reduction <add>, %7, %cst_2 [1] : vector<16x64xf32> to vector<16xf32>
    %9 = vector.shape_cast %8 : vector<16xf32> to vector<16x1xf32>
    %cst_3 = arith.constant 0.0158730168 : f32
    %10 = vector.broadcast %cst_3 : f32 to vector<16x1xf32>
    %11 = arith.mulf %9, %10 : vector<16x1xf32>
    %c0_4 = arith.constant 0 : index
    %c0_5 = arith.constant 0 : index
    %12 = vector.load %arg5[%c0_4, %c0_5] : memref<1x64xf32, #tpu.memory_space<vmem>>, vector<1x64xf32>
    %13 = vector.broadcast %12 : vector<1x64xf32> to vector<16x64xf32>
    %14 = arith.mulf %13, %6 : vector<16x64xf32>
    %15 = math.sqrt %11 : vector<16x1xf32>
    %cst_6 = arith.constant 9.99999997E-7 : f32
    %16 = vector.broadcast %cst_6 : f32 to vector<16x1xf32>
    %17 = arith.addf %15, %16 : vector<16x1xf32>
    %18 = vector.broadcast %17 : vector<16x1xf32> to vector<16x64xf32>
    %19 = arith.divf %14, %18 : vector<16x64xf32>
    %c0_7 = arith.constant 0 : index
    %c0_8 = arith.constant 0 : index
    %20 = vector.load %arg6[%c0_7, %c0_8] : memref<1x64xf32, #tpu.memory_space<vmem>>, vector<1x64xf32>
    %21 = vector.broadcast %20 : vector<1x64xf32> to vector<16x64xf32>
    %22 = arith.addf %19, %21 : vector<16x64xf32>
    %c0_9 = arith.constant 0 : index
    %c0_10 = arith.constant 0 : index
    %23 = vector.load %arg4[%c0_9, %c0_10] : memref<64x64xf32, #tpu.memory_space<vmem>>, vector<64x64xf32>
    %cst_11 = arith.constant dense<0.000000e+00> : vector<16x64xf32>
    %24 = tpu.matmul %22, %23, %cst_11 {dimension_numbers = #tpu.dot_dimension_numbers<[1], [0], [0], [1], [0, 0, 1, 1], [], []>} : vector<16x64xf32>, vector<64x64xf32>, vector<16x64xf32> -> vector<16x64xf32>
    %c0_12 = arith.constant 0 : index
    %c0_13 = arith.constant 0 : index
    %25 = vector.load %arg7[%c0_12, %c0_13] : memref<16x64xf32, #tpu.memory_space<vmem>>, vector<16x64xf32>
    tpu.vector_store %arg7[%c0_12, %c0_13], %24 {strides = array<i32>} : memref<16x64xf32, #tpu.memory_space<vmem>>, vector<16x64xf32>,
    return
  }
  func.func @transform_0(%arg0: i32, %arg1: i32, %arg2: i32) -> (i32, i32) {
    %c0_i32 = arith.constant 0 : i32
    return %arg0, %arg2 : i32, i32
  }
  func.func @transform_1(%arg0: i32, %arg1: i32, %arg2: i32) -> (i32, i32) {
    %c0_i32 = arith.constant 0 : i32
    return %arg2, %arg1 : i32, i32
  }
  func.func @transform_2(%arg0: i32, %arg1: i32, %arg2: i32) -> (i32, i32) {
    %c0_i32 = arith.constant 0 : i32
    %c0_i32_0 = arith.constant 0 : i32
    return %c0_i32, %arg2 : i32, i32
  }
  func.func @transform_3(%arg0: i32, %arg1: i32, %arg2: i32) -> (i32, i32) {
    %c0_i32 = arith.constant 0 : i32
    %c0_i32_0 = arith.constant 0 : i32
    return %c0_i32, %arg2 : i32, i32
  }
  func.func @transform_4(%arg0: i32, %arg1: i32, %arg2: i32) -> (i32, i32) {
    %c0_i32 = arith.constant 0 : i32
    return %arg0, %arg1 : i32, i32
  }
}

module attributes {stable_mosaic.version = 11 : i64} {
  func.func @_attention_kernel(%arg0: i32, %arg1: memref<1x8x192xf32, #tpu.memory_space<vmem>>, %arg2: memref<1x1x8x8xi32, #tpu.memory_space<vmem>>, %arg3: memref<1x8x64xf32, #tpu.memory_space<vmem>>) attributes {dimension_semantics = [#tpu.dimension_semantics<parallel>], iteration_bounds = array<i64: 2>, scalar_prefetch = 0 : i64, scratch_operands = 0 : i64, tpu.core_type = #tpu.core_type<tc>, window_params = [{transform_indices = @transform_0, window_bounds = array<i64: 1, 8, 192>}, {pipeline_mode = #tpu.pipeline_mode<synchronous>, transform_indices = @transform_1, window_bounds = array<i64: 1, 1, 8, 8>}, {transform_indices = @transform_2, window_bounds = array<i64: 1, 8, 64>}]} {
    %c0 = arith.constant 0 : index
    %c0_0 = arith.constant 0 : index
    %c0_1 = arith.constant 0 : index
    %0 = vector.load %arg1[%c0, %c0_0, %c0_1] : memref<1x8x192xf32, #tpu.memory_space<vmem>>, vector<1x8x192xf32>
    %1 = vector.shape_cast %0 : vector<1x8x192xf32> to vector<8x192xf32>
    %c0_2 = arith.constant 0 : index
    %c0_3 = arith.constant 0 : index
    %c0_4 = arith.constant 0 : index
    %c0_5 = arith.constant 0 : index
    %2 = vector.load %arg2[%c0_2, %c0_3, %c0_4, %c0_5] : memref<1x1x8x8xi32, #tpu.memory_space<vmem>>, vector<1x1x8x8xi32>
    %3 = vector.shape_cast %2 : vector<1x1x8x8xi32> to vector<1x8x8xi32>
    %4 = vector.extract_strided_slice %1 {offsets = [0, 0], sizes = [8, 16], strides = [1, 1]} : vector<8x192xf32> to vector<8x16xf32>
    %5 = vector.extract_strided_slice %1 {offsets = [0, 64], sizes = [8, 16], strides = [1, 1]} : vector<8x192xf32> to vector<8x16xf32>
    %6 = vector.extract_strided_slice %1 {offsets = [0, 128], sizes = [8, 16], strides = [1, 1]} : vector<8x192xf32> to vector<8x16xf32>
    %cst = arith.constant dense<0.000000e+00> : vector<8x8xf32>
    %7 = tpu.matmul %4, %5, %cst {dimension_numbers = #tpu.dot_dimension_numbers<[1], [1], [0], [0], [0, 0, 1, 0], [], []>} : vector<8x16xf32>, vector<8x16xf32>, vector<8x8xf32> -> vector<8x8xf32>
    %cst_6 = arith.constant 2.500000e-01 : f32
    %8 = vector.broadcast %cst_6 : f32 to vector<8x8xf32>
    %9 = arith.mulf %7, %8 : vector<8x8xf32>
    %10 = vector.shape_cast %3 : vector<1x8x8xi32> to vector<8x8xi32>
    %c0_i32 = arith.constant 0 : i32
    %11 = vector.broadcast %c0_i32 : i32 to vector<8x8xi32>
    %12 = arith.cmpi eq, %10, %11 : vector<8x8xi32>
    %cst_7 = arith.constant -1.000000e+09 : f32
    %13 = vector.broadcast %cst_7 : f32 to vector<8x8xf32>
    %14 = arith.select %12, %13, %9 : vector<8x8xi1>, vector<8x8xf32>
    %cst_8 = arith.constant dense<0xFF800000> : vector<8xf32>
    %15 = vector.multi_reduction <maximumf>, %14, %cst_8 [1] : vector<8x8xf32> to vector<8xf32>
    %16 = vector.shape_cast %15 : vector<8xf32> to vector<8x1xf32>
    %17 = vector.broadcast %16 : vector<8x1xf32> to vector<8x8xf32>
    %18 = arith.subf %14, %17 : vector<8x8xf32>
    %19 = math.exp %18 : vector<8x8xf32>
    %cst_9 = arith.constant dense<0.000000e+00> : vector<8xf32>
    %20 = vector.multi_reduction <add>, %19, %cst_9 [1] : vector<8x8xf32> to vector<8xf32>
    %21 = vector.shape_cast %20 : vector<8xf32> to vector<8x1xf32>
    %22 = tpu.reciprocal %21 {approx = true} : vector<8x1xf32> -> vector<8x1xf32>
    %23 = vector.broadcast %22 : vector<8x1xf32> to vector<8x8xf32>
    %24 = arith.mulf %19, %23 : vector<8x8xf32>
    %cst_10 = arith.constant dense<0.000000e+00> : vector<8x16xf32>
    %25 = tpu.matmul %24, %6, %cst_10 {dimension_numbers = #tpu.dot_dimension_numbers<[1], [0], [0], [1], [0, 0, 1, 1], [], []>} : vector<8x8xf32>, vector<8x16xf32>, vector<8x16xf32> -> vector<8x16xf32>
    %26 = vector.extract_strided_slice %1 {offsets = [0, 16], sizes = [8, 16], strides = [1, 1]} : vector<8x192xf32> to vector<8x16xf32>
    %27 = vector.extract_strided_slice %1 {offsets = [0, 80], sizes = [8, 16], strides = [1, 1]} : vector<8x192xf32> to vector<8x16xf32>
    %28 = vector.extract_strided_slice %1 {offsets = [0, 144], sizes = [8, 16], strides = [1, 1]} : vector<8x192xf32> to vector<8x16xf32>
    %cst_11 = arith.constant dense<0.000000e+00> : vector<8x8xf32>
    %29 = tpu.matmul %26, %27, %cst_11 {dimension_numbers = #tpu.dot_dimension_numbers<[1], [1], [0], [0], [0, 0, 1, 0], [], []>} : vector<8x16xf32>, vector<8x16xf32>, vector<8x8xf32> -> vector<8x8xf32>
    %cst_12 = arith.constant 2.500000e-01 : f32
    %30 = vector.broadcast %cst_12 : f32 to vector<8x8xf32>
    %31 = arith.mulf %29, %30 : vector<8x8xf32>
    %32 = vector.shape_cast %3 : vector<1x8x8xi32> to vector<8x8xi32>
    %c0_i32_13 = arith.constant 0 : i32
    %33 = vector.broadcast %c0_i32_13 : i32 to vector<8x8xi32>
    %34 = arith.cmpi eq, %32, %33 : vector<8x8xi32>
    %cst_14 = arith.constant -1.000000e+09 : f32
    %35 = vector.broadcast %cst_14 : f32 to vector<8x8xf32>
    %36 = arith.select %34, %35, %31 : vector<8x8xi1>, vector<8x8xf32>
    %cst_15 = arith.constant dense<0xFF800000> : vector<8xf32>
    %37 = vector.multi_reduction <maximumf>, %36, %cst_15 [1] : vector<8x8xf32> to vector<8xf32>
    %38 = vector.shape_cast %37 : vector<8xf32> to vector<8x1xf32>
    %39 = vector.broadcast %38 : vector<8x1xf32> to vector<8x8xf32>
    %40 = arith.subf %36, %39 : vector<8x8xf32>
    %41 = math.exp %40 : vector<8x8xf32>
    %cst_16 = arith.constant dense<0.000000e+00> : vector<8xf32>
    %42 = vector.multi_reduction <add>, %41, %cst_16 [1] : vector<8x8xf32> to vector<8xf32>
    %43 = vector.shape_cast %42 : vector<8xf32> to vector<8x1xf32>
    %44 = tpu.reciprocal %43 {approx = true} : vector<8x1xf32> -> vector<8x1xf32>
    %45 = vector.broadcast %44 : vector<8x1xf32> to vector<8x8xf32>
    %46 = arith.mulf %41, %45 : vector<8x8xf32>
    %cst_17 = arith.constant dense<0.000000e+00> : vector<8x16xf32>
    %47 = tpu.matmul %46, %28, %cst_17 {dimension_numbers = #tpu.dot_dimension_numbers<[1], [0], [0], [1], [0, 0, 1, 1], [], []>} : vector<8x8xf32>, vector<8x16xf32>, vector<8x16xf32> -> vector<8x16xf32>
    %48 = vector.extract_strided_slice %1 {offsets = [0, 32], sizes = [8, 16], strides = [1, 1]} : vector<8x192xf32> to vector<8x16xf32>
    %49 = vector.extract_strided_slice %1 {offsets = [0, 96], sizes = [8, 16], strides = [1, 1]} : vector<8x192xf32> to vector<8x16xf32>
    %50 = vector.extract_strided_slice %1 {offsets = [0, 160], sizes = [8, 16], strides = [1, 1]} : vector<8x192xf32> to vector<8x16xf32>
    %cst_18 = arith.constant dense<0.000000e+00> : vector<8x8xf32>
    %51 = tpu.matmul %48, %49, %cst_18 {dimension_numbers = #tpu.dot_dimension_numbers<[1], [1], [0], [0], [0, 0, 1, 0], [], []>} : vector<8x16xf32>, vector<8x16xf32>, vector<8x8xf32> -> vector<8x8xf32>
    %cst_19 = arith.constant 2.500000e-01 : f32
    %52 = vector.broadcast %cst_19 : f32 to vector<8x8xf32>
    %53 = arith.mulf %51, %52 : vector<8x8xf32>
    %54 = vector.shape_cast %3 : vector<1x8x8xi32> to vector<8x8xi32>
    %c0_i32_20 = arith.constant 0 : i32
    %55 = vector.broadcast %c0_i32_20 : i32 to vector<8x8xi32>
    %56 = arith.cmpi eq, %54, %55 : vector<8x8xi32>
    %cst_21 = arith.constant -1.000000e+09 : f32
    %57 = vector.broadcast %cst_21 : f32 to vector<8x8xf32>
    %58 = arith.select %56, %57, %53 : vector<8x8xi1>, vector<8x8xf32>
    %cst_22 = arith.constant dense<0xFF800000> : vector<8xf32>
    %59 = vector.multi_reduction <maximumf>, %58, %cst_22 [1] : vector<8x8xf32> to vector<8xf32>
    %60 = vector.shape_cast %59 : vector<8xf32> to vector<8x1xf32>
    %61 = vector.broadcast %60 : vector<8x1xf32> to vector<8x8xf32>
    %62 = arith.subf %58, %61 : vector<8x8xf32>
    %63 = math.exp %62 : vector<8x8xf32>
    %cst_23 = arith.constant dense<0.000000e+00> : vector<8xf32>
    %64 = vector.multi_reduction <add>, %63, %cst_23 [1] : vector<8x8xf32> to vector<8xf32>
    %65 = vector.shape_cast %64 : vector<8xf32> to vector<8x1xf32>
    %66 = tpu.reciprocal %65 {approx = true} : vector<8x1xf32> -> vector<8x1xf32>
    %67 = vector.broadcast %66 : vector<8x1xf32> to vector<8x8xf32>
    %68 = arith.mulf %63, %67 : vector<8x8xf32>
    %cst_24 = arith.constant dense<0.000000e+00> : vector<8x16xf32>
    %69 = tpu.matmul %68, %50, %cst_24 {dimension_numbers = #tpu.dot_dimension_numbers<[1], [0], [0], [1], [0, 0, 1, 1], [], []>} : vector<8x8xf32>, vector<8x16xf32>, vector<8x16xf32> -> vector<8x16xf32>
    %70 = vector.extract_strided_slice %1 {offsets = [0, 48], sizes = [8, 16], strides = [1, 1]} : vector<8x192xf32> to vector<8x16xf32>
    %71 = vector.extract_strided_slice %1 {offsets = [0, 112], sizes = [8, 16], strides = [1, 1]} : vector<8x192xf32> to vector<8x16xf32>
    %72 = vector.extract_strided_slice %1 {offsets = [0, 176], sizes = [8, 16], strides = [1, 1]} : vector<8x192xf32> to vector<8x16xf32>
    %cst_25 = arith.constant dense<0.000000e+00> : vector<8x8xf32>
    %73 = tpu.matmul %70, %71, %cst_25 {dimension_numbers = #tpu.dot_dimension_numbers<[1], [1], [0], [0], [0, 0, 1, 0], [], []>} : vector<8x16xf32>, vector<8x16xf32>, vector<8x8xf32> -> vector<8x8xf32>
    %cst_26 = arith.constant 2.500000e-01 : f32
    %74 = vector.broadcast %cst_26 : f32 to vector<8x8xf32>
    %75 = arith.mulf %73, %74 : vector<8x8xf32>
    %76 = vector.shape_cast %3 : vector<1x8x8xi32> to vector<8x8xi32>
    %c0_i32_27 = arith.constant 0 : i32
    %77 = vector.broadcast %c0_i32_27 : i32 to vector<8x8xi32>
    %78 = arith.cmpi eq, %76, %77 : vector<8x8xi32>
    %cst_28 = arith.constant -1.000000e+09 : f32
    %79 = vector.broadcast %cst_28 : f32 to vector<8x8xf32>
    %80 = arith.select %78, %79, %75 : vector<8x8xi1>, vector<8x8xf32>
    %cst_29 = arith.constant dense<0xFF800000> : vector<8xf32>
    %81 = vector.multi_reduction <maximumf>, %80, %cst_29 [1] : vector<8x8xf32> to vector<8xf32>
    %82 = vector.shape_cast %81 : vector<8xf32> to vector<8x1xf32>
    %83 = vector.broadcast %82 : vector<8x1xf32> to vector<8x8xf32>
    %84 = arith.subf %80, %83 : vector<8x8xf32>
    %85 = math.exp %84 : vector<8x8xf32>
    %cst_30 = arith.constant dense<0.000000e+00> : vector<8xf32>
    %86 = vector.multi_reduction <add>, %85, %cst_30 [1] : vector<8x8xf32> to vector<8xf32>
    %87 = vector.shape_cast %86 : vector<8xf32> to vector<8x1xf32>
    %88 = tpu.reciprocal %87 {approx = true} : vector<8x1xf32> -> vector<8x1xf32>
    %89 = vector.broadcast %88 : vector<8x1xf32> to vector<8x8xf32>
    %90 = arith.mulf %85, %89 : vector<8x8xf32>
    %cst_31 = arith.constant dense<0.000000e+00> : vector<8x16xf32>
    %91 = tpu.matmul %90, %72, %cst_31 {dimension_numbers = #tpu.dot_dimension_numbers<[1], [0], [0], [1], [0, 0, 1, 1], [], []>} : vector<8x8xf32>, vector<8x16xf32>, vector<8x16xf32> -> vector<8x16xf32>
    %92 = tpu.concatenate %25, %47, %69, %91 in 1 : vector<8x16xf32>, vector<8x16xf32>, vector<8x16xf32>, vector<8x16xf32> -> vector<8x64xf32>
    %c0_32 = arith.constant 0 : index
    %c0_33 = arith.constant 0 : index
    %c0_34 = arith.constant 0 : index
    %93 = vector.load %arg3[%c0_32, %c0_33, %c0_34] : memref<1x8x64xf32, #tpu.memory_space<vmem>>, vector<1x8x64xf32>
    %94 = vector.shape_cast %93 : vector<1x8x64xf32> to vector<8x64xf32>
    %95 = vector.shape_cast %92 : vector<8x64xf32> to vector<1x8x64xf32>
    tpu.vector_store %arg3[%c0_32, %c0_33, %c0_34], %95 {strides = array<i32>} : memref<1x8x64xf32, #tpu.memory_space<vmem>>, vector<1x8x64xf32>,
    return
  }
  func.func @transform_0(%arg0: i32) -> (i32, i32, i32) {
    %c0_i32 = arith.constant 0 : i32
    %c0_i32_0 = arith.constant 0 : i32
    %c0_i32_1 = arith.constant 0 : i32
    return %arg0, %c0_i32, %c0_i32_0 : i32, i32, i32
  }
  func.func @transform_1(%arg0: i32) -> (i32, i32, i32, i32) {
    %c0_i32 = arith.constant 0 : i32
    %c0_i32_0 = arith.constant 0 : i32
    %c0_i32_1 = arith.constant 0 : i32
    %c0_i32_2 = arith.constant 0 : i32
    %c0_i32_3 = arith.constant 0 : i32
    return %c0_i32, %c0_i32_0, %c0_i32_1, %c0_i32_2 : i32, i32, i32, i32
  }
  func.func @transform_2(%arg0: i32) -> (i32, i32, i32) {
    %c0_i32 = arith.constant 0 : i32
    %c0_i32_0 = arith.constant 0 : i32
    %c0_i32_1 = arith.constant 0 : i32
    return %arg0, %c0_i32, %c0_i32_0 : i32, i32, i32
  }
}

module attributes {stable_mosaic.version = 11 : i64} {
  func.func @kernel(%arg0: i32, %arg1: i32, %arg2: i32, %arg3: memref<16x64xf32, #tpu.memory_space<vmem>>, %arg4: memref<64x64xf32, #tpu.memory_space<vmem>>, %arg5: memref<16x64xf32, #tpu.memory_space<vmem>>, %arg6: memref<16x64xf32, #tpu.memory_space<vmem>>) attributes {dimension_semantics = [#tpu.dimension_semantics<parallel>, #tpu.dimension_semantics<parallel>, #tpu.dimension_semantics<arbitrary>], iteration_bounds = array<i64: 1, 1, 1>, scalar_prefetch = 0 : i64, scratch_operands = 0 : i64, tpu.core_type = #tpu.core_type<tc>, window_params = [{transform_indices = @transform_0, window_bounds = array<i64: 16, 64>}, {transform_indices = @transform_1, window_bounds = array<i64: 64, 64>}, {transform_indices = @transform_2, window_bounds = array<i64: 16, 64>}, {transform_indices = @transform_3, window_bounds = array<i64: 16, 64>}]} {
    %c0 = arith.constant 0 : index
    %c0_0 = arith.constant 0 : index
    %0 = vector.load %arg3[%c0, %c0_0] : memref<16x64xf32, #tpu.memory_space<vmem>>, vector<16x64xf32>
    %c0_1 = arith.constant 0 : index
    %c0_2 = arith.constant 0 : index
    %1 = vector.load %arg4[%c0_1, %c0_2] : memref<64x64xf32, #tpu.memory_space<vmem>>, vector<64x64xf32>
    %cst = arith.constant dense<0.000000e+00> : vector<16x64xf32>
    %2 = tpu.matmul %0, %1, %cst {dimension_numbers = #tpu.dot_dimension_numbers<[1], [0], [0], [1], [0, 0, 1, 1], [], []>} : vector<16x64xf32>, vector<64x64xf32>, vector<16x64xf32> -> vector<16x64xf32>
    %c0_3 = arith.constant 0 : index
    %c0_4 = arith.constant 0 : index
    %3 = vector.load %arg5[%c0_3, %c0_4] : memref<16x64xf32, #tpu.memory_space<vmem>>, vector<16x64xf32>
    %4 = arith.addf %2, %3 : vector<16x64xf32>
    %c0_5 = arith.constant 0 : index
    %c0_6 = arith.constant 0 : index
    %5 = vector.load %arg6[%c0_5, %c0_6] : memref<16x64xf32, #tpu.memory_space<vmem>>, vector<16x64xf32>
    tpu.vector_store %arg6[%c0_5, %c0_6], %4 {strides = array<i32>} : memref<16x64xf32, #tpu.memory_space<vmem>>, vector<16x64xf32>,
    return
  }
  func.func @transform_0(%arg0: i32, %arg1: i32, %arg2: i32) -> (i32, i32) {
    %c0_i32 = arith.constant 0 : i32
    return %arg0, %arg2 : i32, i32
  }
  func.func @transform_1(%arg0: i32, %arg1: i32, %arg2: i32) -> (i32, i32) {
    %c0_i32 = arith.constant 0 : i32
    return %arg2, %arg1 : i32, i32
  }
  func.func @transform_2(%arg0: i32, %arg1: i32, %arg2: i32) -> (i32, i32) {
    %c0_i32 = arith.constant 0 : i32
    return %arg0, %arg1 : i32, i32
  }
  func.func @transform_3(%arg0: i32, %arg1: i32, %arg2: i32) -> (i32, i32) {
    %c0_i32 = arith.constant 0 : i32
    return %arg0, %arg1 : i32, i32
  }
}

module attributes {stable_mosaic.version = 11 : i64} {
  func.func @kernel(%arg0: i32, %arg1: i32, %arg2: i32, %arg3: memref<16x64xf32, #tpu.memory_space<vmem>>, %arg4: memref<64x128xf32, #tpu.memory_space<vmem>>, %arg5: memref<16x128xf32, #tpu.memory_space<vmem>>) attributes {dimension_semantics = [#tpu.dimension_semantics<parallel>, #tpu.dimension_semantics<parallel>, #tpu.dimension_semantics<arbitrary>], iteration_bounds = array<i64: 1, 1, 1>, scalar_prefetch = 0 : i64, scratch_operands = 0 : i64, tpu.core_type = #tpu.core_type<tc>, window_params = [{transform_indices = @transform_0, window_bounds = array<i64: 16, 64>}, {transform_indices = @transform_1, window_bounds = array<i64: 64, 128>}, {transform_indices = @transform_2, window_bounds = array<i64: 16, 128>}]} {
    %c0 = arith.constant 0 : index
    %c0_0 = arith.constant 0 : index
    %0 = vector.load %arg3[%c0, %c0_0] : memref<16x64xf32, #tpu.memory_space<vmem>>, vector<16x64xf32>
    %c0_1 = arith.constant 0 : index
    %c0_2 = arith.constant 0 : index
    %1 = vector.load %arg4[%c0_1, %c0_2] : memref<64x128xf32, #tpu.memory_space<vmem>>, vector<64x128xf32>
    %cst = arith.constant dense<0.000000e+00> : vector<16x128xf32>
    %2 = tpu.matmul %0, %1, %cst {dimension_numbers = #tpu.dot_dimension_numbers<[1], [0], [0], [1], [0, 0, 1, 1], [], []>} : vector<16x64xf32>, vector<64x128xf32>, vector<16x128xf32> -> vector<16x128xf32>
    %c0_3 = arith.constant 0 : index
    %c0_4 = arith.constant 0 : index
    %3 = vector.load %arg5[%c0_3, %c0_4] : memref<16x128xf32, #tpu.memory_space<vmem>>, vector<16x128xf32>
    tpu.vector_store %arg5[%c0_3, %c0_4], %2 {strides = array<i32>} : memref<16x128xf32, #tpu.memory_space<vmem>>, vector<16x128xf32>,
    return
  }
  func.func @transform_0(%arg0: i32, %arg1: i32, %arg2: i32) -> (i32, i32) {
    %c0_i32 = arith.constant 0 : i32
    return %arg0, %arg2 : i32, i32
  }
  func.func @transform_1(%arg0: i32, %arg1: i32, %arg2: i32) -> (i32, i32) {
    %c0_i32 = arith.constant 0 : i32
    return %arg2, %arg1 : i32, i32
  }
  func.func @transform_2(%arg0: i32, %arg1: i32, %arg2: i32) -> (i32, i32) {
    %c0_i32 = arith.constant 0 : i32
    return %arg0, %arg1 : i32, i32
  }
}

module attributes {stable_mosaic.version = 11 : i64} {
  func.func @_attention_kernel(%arg0: i32, %arg1: memref<1x8x64xf32, #tpu.memory_space<vmem>>, %arg2: memref<1x8x128xf32, #tpu.memory_space<vmem>>, %arg3: memref<1x1x1x8xi32, #tpu.memory_space<vmem>>, %arg4: memref<1x8x64xf32, #tpu.memory_space<vmem>>) attributes {dimension_semantics = [#tpu.dimension_semantics<parallel>], iteration_bounds = array<i64: 2>, scalar_prefetch = 0 : i64, scratch_operands = 0 : i64, tpu.core_type = #tpu.core_type<tc>, window_params = [{transform_indices = @transform_0, window_bounds = array<i64: 1, 8, 64>}, {transform_indices = @transform_1, window_bounds = array<i64: 1, 8, 128>}, {transform_indices = @transform_2, window_bounds = array<i64: 1, 1, 1, 8>}, {transform_indices = @transform_3, window_bounds = array<i64: 1, 8, 64>}]} {
    %c0 = arith.constant 0 : index
    %c0_0 = arith.constant 0 : index
    %c0_1 = arith.constant 0 : index
    %0 = vector.load %arg1[%c0, %c0_0, %c0_1] : memref<1x8x64xf32, #tpu.memory_space<vmem>>, vector<1x8x64xf32>
    %1 = vector.shape_cast %0 : vector<1x8x64xf32> to vector<8x64xf32>
    %c0_2 = arith.constant 0 : index
    %c0_3 = arith.constant 0 : index
    %c0_4 = arith.constant 0 : index
    %2 = vector.load %arg2[%c0_2, %c0_3, %c0_4] : memref<1x8x128xf32, #tpu.memory_space<vmem>>, vector<1x8x128xf32>
    %3 = vector.shape_cast %2 : vector<1x8x128xf32> to vector<8x128xf32>
    %c0_5 = arith.constant 0 : index
    %c0_6 = arith.constant 0 : index
    %c0_7 = arith.constant 0 : index
    %c0_8 = arith.constant 0 : index
    %4 = vector.load %arg3[%c0_5, %c0_6, %c0_7, %c0_8] : memref<1x1x1x8xi32, #tpu.memory_space<vmem>>, vector<1x1x1x8xi32>
    %5 = vector.shape_cast %4 : vector<1x1x1x8xi32> to vector<1x1x8xi32>
    %6 = vector.extract_strided_slice %1 {offsets = [0, 0], sizes = [8, 16], strides = [1, 1]} : vector<8x64xf32> to vector<8x16xf32>
    %7 = vector.extract_strided_slice %3 {offsets = [0, 0], sizes = [8, 16], strides = [1, 1]} : vector<8x128xf32> to vector<8x16xf32>
    %8 = vector.extract_strided_slice %3 {offsets = [0, 64], sizes = [8, 16], strides = [1, 1]} : vector<8x128xf32> to vector<8x16xf32>
    %cst = arith.constant dense<0.000000e+00> : vector<8x8xf32>
    %9 = tpu.matmul %6, %7, %cst {dimension_numbers = #tpu.dot_dimension_numbers<[1], [1], [0], [0], [0, 0, 1, 0], [], []>} : vector<8x16xf32>, vector<8x16xf32>, vector<8x8xf32> -> vector<8x8xf32>
    %cst_9 = arith.constant 2.500000e-01 : f32
    %10 = vector.broadcast %cst_9 : f32 to vector<8x8xf32>
    %11 = arith.mulf %9, %10 : vector<8x8xf32>
    %12 = vector.shape_cast %5 : vector<1x1x8xi32> to vector<1x8xi32>
    %c0_i32 = arith.constant 0 : i32
    %13 = vector.broadcast %c0_i32 : i32 to vector<1x8xi32>
    %14 = arith.cmpi eq, %12, %13 : vector<1x8xi32>
    %cst_10 = arith.constant -1.000000e+09 : f32
    %15 = vector.shape_cast %14 : vector<1x8xi1> to vector<1x8xi1>
    %16 = vector.broadcast %15 : vector<1x8xi1> to vector<8x8xi1>
    %17 = vector.broadcast %cst_10 : f32 to vector<8x8xf32>
    %18 = arith.select %16, %17, %11 : vector<8x8xi1>, vector<8x8xf32>
    %cst_11 = arith.constant dense<0xFF800000> : vector<8xf32>
    %19 = vector.multi_reduction <maximumf>, %18, %cst_11 [1] : vector<8x8xf32> to vector<8xf32>
    %20 = vector.shape_cast %19 : vector<8xf32> to vector<8x1xf32>
    %21 = vector.broadcast %20 : vector<8x1xf32> to vector<8x8xf32>
    %22 = arith.subf %18, %21 : vector<8x8xf32>
    %23 = math.exp %22 : vector<8x8xf32>
    %cst_12 = arith.constant dense<0.000000e+00> : vector<8xf32>
    %24 = vector.multi_reduction <add>, %23, %cst_12 [1] : vector<8x8xf32> to vector<8xf32>
    %25 = vector.shape_cast %24 : vector<8xf32> to vector<8x1xf32>
    %26 = tpu.reciprocal %25 {approx = true} : vector<8x1xf32> -> vector<8x1xf32>
    %27 = vector.broadcast %26 : vector<8x1xf32> to vector<8x8xf32>
    %28 = arith.mulf %23, %27 : vector<8x8xf32>
    %cst_13 = arith.constant dense<0.000000e+00> : vector<8x16xf32>
    %29 = tpu.matmul %28, %8, %cst_13 {dimension_numbers = #tpu.dot_dimension_numbers<[1], [0], [0], [1], [0, 0, 1, 1], [], []>} : vector<8x8xf32>, vector<8x16xf32>, vector<8x16xf32> -> vector<8x16xf32>
    %30 = vector.extract_strided_slice %1 {offsets = [0, 16], sizes = [8, 16], strides = [1, 1]} : vector<8x64xf32> to vector<8x16xf32>
    %31 = vector.extract_strided_slice %3 {offsets = [0, 16], sizes = [8, 16], strides = [1, 1]} : vector<8x128xf32> to vector<8x16xf32>
    %32 = vector.extract_strided_slice %3 {offsets = [0, 80], sizes = [8, 16], strides = [1, 1]} : vector<8x128xf32> to vector<8x16xf32>
    %cst_14 = arith.constant dense<0.000000e+00> : vector<8x8xf32>
    %33 = tpu.matmul %30, %31, %cst_14 {dimension_numbers = #tpu.dot_dimension_numbers<[1], [1], [0], [0], [0, 0, 1, 0], [], []>} : vector<8x16xf32>, vector<8x16xf32>, vector<8x8xf32> -> vector<8x8xf32>
    %cst_15 = arith.constant 2.500000e-01 : f32
    %34 = vector.broadcast %cst_15 : f32 to vector<8x8xf32>
    %35 = arith.mulf %33, %34 : vector<8x8xf32>
    %36 = vector.shape_cast %5 : vector<1x1x8xi32> to vector<1x8xi32>
    %c0_i32_16 = arith.constant 0 : i32
    %37 = vector.broadcast %c0_i32_16 : i32 to vector<1x8xi32>
    %38 = arith.cmpi eq, %36, %37 : vector<1x8xi32>
    %cst_17 = arith.constant -1.000000e+09 : f32
    %39 = vector.shape_cast %38 : vector<1x8xi1> to vector<1x8xi1>
    %40 = vector.broadcast %39 : vector<1x8xi1> to vector<8x8xi1>
    %41 = vector.broadcast %cst_17 : f32 to vector<8x8xf32>
    %42 = arith.select %40, %41, %35 : vector<8x8xi1>, vector<8x8xf32>
    %cst_18 = arith.constant dense<0xFF800000> : vector<8xf32>
    %43 = vector.multi_reduction <maximumf>, %42, %cst_18 [1] : vector<8x8xf32> to vector<8xf32>
    %44 = vector.shape_cast %43 : vector<8xf32> to vector<8x1xf32>
    %45 = vector.broadcast %44 : vector<8x1xf32> to vector<8x8xf32>
    %46 = arith.subf %42, %45 : vector<8x8xf32>
    %47 = math.exp %46 : vector<8x8xf32>
    %cst_19 = arith.constant dense<0.000000e+00> : vector<8xf32>
    %48 = vector.multi_reduction <add>, %47, %cst_19 [1] : vector<8x8xf32> to vector<8xf32>
    %49 = vector.shape_cast %48 : vector<8xf32> to vector<8x1xf32>
    %50 = tpu.reciprocal %49 {approx = true} : vector<8x1xf32> -> vector<8x1xf32>
    %51 = vector.broadcast %50 : vector<8x1xf32> to vector<8x8xf32>
    %52 = arith.mulf %47, %51 : vector<8x8xf32>
    %cst_20 = arith.constant dense<0.000000e+00> : vector<8x16xf32>
    %53 = tpu.matmul %52, %32, %cst_20 {dimension_numbers = #tpu.dot_dimension_numbers<[1], [0], [0], [1], [0, 0, 1, 1], [], []>} : vector<8x8xf32>, vector<8x16xf32>, vector<8x16xf32> -> vector<8x16xf32>
    %54 = vector.extract_strided_slice %1 {offsets = [0, 32], sizes = [8, 16], strides = [1, 1]} : vector<8x64xf32> to vector<8x16xf32>
    %55 = vector.extract_strided_slice %3 {offsets = [0, 32], sizes = [8, 16], strides = [1, 1]} : vector<8x128xf32> to vector<8x16xf32>
    %56 = vector.extract_strided_slice %3 {offsets = [0, 96], sizes = [8, 16], strides = [1, 1]} : vector<8x128xf32> to vector<8x16xf32>
    %cst_21 = arith.constant dense<0.000000e+00> : vector<8x8xf32>
    %57 = tpu.matmul %54, %55, %cst_21 {dimension_numbers = #tpu.dot_dimension_numbers<[1], [1], [0], [0], [0, 0, 1, 0], [], []>} : vector<8x16xf32>, vector<8x16xf32>, vector<8x8xf32> -> vector<8x8xf32>
    %cst_22 = arith.constant 2.500000e-01 : f32
    %58 = vector.broadcast %cst_22 : f32 to vector<8x8xf32>
    %59 = arith.mulf %57, %58 : vector<8x8xf32>
    %60 = vector.shape_cast %5 : vector<1x1x8xi32> to vector<1x8xi32>
    %c0_i32_23 = arith.constant 0 : i32
    %61 = vector.broadcast %c0_i32_23 : i32 to vector<1x8xi32>
    %62 = arith.cmpi eq, %60, %61 : vector<1x8xi32>
    %cst_24 = arith.constant -1.000000e+09 : f32
    %63 = vector.shape_cast %62 : vector<1x8xi1> to vector<1x8xi1>
    %64 = vector.broadcast %63 : vector<1x8xi1> to vector<8x8xi1>
    %65 = vector.broadcast %cst_24 : f32 to vector<8x8xf32>
    %66 = arith.select %64, %65, %59 : vector<8x8xi1>, vector<8x8xf32>
    %cst_25 = arith.constant dense<0xFF800000> : vector<8xf32>
    %67 = vector.multi_reduction <maximumf>, %66, %cst_25 [1] : vector<8x8xf32> to vector<8xf32>
    %68 = vector.shape_cast %67 : vector<8xf32> to vector<8x1xf32>
    %69 = vector.broadcast %68 : vector<8x1xf32> to vector<8x8xf32>
    %70 = arith.subf %66, %69 : vector<8x8xf32>
    %71 = math.exp %70 : vector<8x8xf32>
    %cst_26 = arith.constant dense<0.000000e+00> : vector<8xf32>
    %72 = vector.multi_reduction <add>, %71, %cst_26 [1] : vector<8x8xf32> to vector<8xf32>
    %73 = vector.shape_cast %72 : vector<8xf32> to vector<8x1xf32>
    %74 = tpu.reciprocal %73 {approx = true} : vector<8x1xf32> -> vector<8x1xf32>
    %75 = vector.broadcast %74 : vector<8x1xf32> to vector<8x8xf32>
    %76 = arith.mulf %71, %75 : vector<8x8xf32>
    %cst_27 = arith.constant dense<0.000000e+00> : vector<8x16xf32>
    %77 = tpu.matmul %76, %56, %cst_27 {dimension_numbers = #tpu.dot_dimension_numbers<[1], [0], [0], [1], [0, 0, 1, 1], [], []>} : vector<8x8xf32>, vector<8x16xf32>, vector<8x16xf32> -> vector<8x16xf32>
    %78 = vector.extract_strided_slice %1 {offsets = [0, 48], sizes = [8, 16], strides = [1, 1]} : vector<8x64xf32> to vector<8x16xf32>
    %79 = vector.extract_strided_slice %3 {offsets = [0, 48], sizes = [8, 16], strides = [1, 1]} : vector<8x128xf32> to vector<8x16xf32>
    %80 = vector.extract_strided_slice %3 {offsets = [0, 112], sizes = [8, 16], strides = [1, 1]} : vector<8x128xf32> to vector<8x16xf32>
    %cst_28 = arith.constant dense<0.000000e+00> : vector<8x8xf32>
    %81 = tpu.matmul %78, %79, %cst_28 {dimension_numbers = #tpu.dot_dimension_numbers<[1], [1], [0], [0], [0, 0, 1, 0], [], []>} : vector<8x16xf32>, vector<8x16xf32>, vector<8x8xf32> -> vector<8x8xf32>
    %cst_29 = arith.constant 2.500000e-01 : f32
    %82 = vector.broadcast %cst_29 : f32 to vector<8x8xf32>
    %83 = arith.mulf %81, %82 : vector<8x8xf32>
    %84 = vector.shape_cast %5 : vector<1x1x8xi32> to vector<1x8xi32>
    %c0_i32_30 = arith.constant 0 : i32
    %85 = vector.broadcast %c0_i32_30 : i32 to vector<1x8xi32>
    %86 = arith.cmpi eq, %84, %85 : vector<1x8xi32>
    %cst_31 = arith.constant -1.000000e+09 : f32
    %87 = vector.shape_cast %86 : vector<1x8xi1> to vector<1x8xi1>
    %88 = vector.broadcast %87 : vector<1x8xi1> to vector<8x8xi1>
    %89 = vector.broadcast %cst_31 : f32 to vector<8x8xf32>
    %90 = arith.select %88, %89, %83 : vector<8x8xi1>, vector<8x8xf32>
    %cst_32 = arith.constant dense<0xFF800000> : vector<8xf32>
    %91 = vector.multi_reduction <maximumf>, %90, %cst_32 [1] : vector<8x8xf32> to vector<8xf32>
    %92 = vector.shape_cast %91 : vector<8xf32> to vector<8x1xf32>
    %93 = vector.broadcast %92 : vector<8x1xf32> to vector<8x8xf32>
    %94 = arith.subf %90, %93 : vector<8x8xf32>
    %95 = math.exp %94 : vector<8x8xf32>
    %cst_33 = arith.constant dense<0.000000e+00> : vector<8xf32>
    %96 = vector.multi_reduction <add>, %95, %cst_33 [1] : vector<8x8xf32> to vector<8xf32>
    %97 = vector.shape_cast %96 : vector<8xf32> to vector<8x1xf32>
    %98 = tpu.reciprocal %97 {approx = true} : vector<8x1xf32> -> vector<8x1xf32>
    %99 = vector.broadcast %98 : vector<8x1xf32> to vector<8x8xf32>
    %100 = arith.mulf %95, %99 : vector<8x8xf32>
    %cst_34 = arith.constant dense<0.000000e+00> : vector<8x16xf32>
    %101 = tpu.matmul %100, %80, %cst_34 {dimension_numbers = #tpu.dot_dimension_numbers<[1], [0], [0], [1], [0, 0, 1, 1], [], []>} : vector<8x8xf32>, vector<8x16xf32>, vector<8x16xf32> -> vector<8x16xf32>
    %102 = tpu.concatenate %29, %53, %77, %101 in 1 : vector<8x16xf32>, vector<8x16xf32>, vector<8x16xf32>, vector<8x16xf32> -> vector<8x64xf32>
    %c0_35 = arith.constant 0 : index
    %c0_36 = arith.constant 0 : index
    %c0_37 = arith.constant 0 : index
    %103 = vector.load %arg4[%c0_35, %c0_36, %c0_37] : memref<1x8x64xf32, #tpu.memory_space<vmem>>, vector<1x8x64xf32>
    %104 = vector.shape_cast %103 : vector<1x8x64xf32> to vector<8x64xf32>
    %105 = vector.shape_cast %102 : vector<8x64xf32> to vector<1x8x64xf32>
    tpu.vector_store %arg4[%c0_35, %c0_36, %c0_37], %105 {strides = array<i32>} : memref<1x8x64xf32, #tpu.memory_space<vmem>>, vector<1x8x64xf32>,
    return
  }
  func.func @transform_0(%arg0: i32) -> (i32, i32, i32) {
    %c0_i32 = arith.constant 0 : i32
    %c0_i32_0 = arith.constant 0 : i32
    %c0_i32_1 = arith.constant 0 : i32
    return %arg0, %c0_i32, %c0_i32_0 : i32, i32, i32
  }
  func.func @transform_1(%arg0: i32) -> (i32, i32, i32) {
    %c0_i32 = arith.constant 0 : i32
    %c0_i32_0 = arith.constant 0 : i32
    %c0_i32_1 = arith.constant 0 : i32
    return %arg0, %c0_i32, %c0_i32_0 : i32, i32, i32
  }
  func.func @transform_2(%arg0: i32) -> (i32, i32, i32, i32) {
    %c0_i32 = arith.constant 0 : i32
    %c0_i32_0 = arith.constant 0 : i32
    %c0_i32_1 = arith.constant 0 : i32
    %c0_i32_2 = arith.constant 0 : i32
    return %arg0, %c0_i32, %c0_i32_0, %c0_i32_1 : i32, i32, i32, i32
  }
  func.func @transform_3(%arg0: i32) -> (i32, i32, i32) {
    %c0_i32 = arith.constant 0 : i32
    %c0_i32_0 = arith.constant 0 : i32
    %c0_i32_1 = arith.constant 0 : i32
    return %arg0, %c0_i32, %c0_i32_0 : i32, i32, i32
  }
}

module attributes {stable_mosaic.version = 11 : i64} {
  func.func @kernel(%arg0: i32, %arg1: i32, %arg2: i32, %arg3: memref<16x64xf32, #tpu.memory_space<vmem>>, %arg4: memref<64x128xf32, #tpu.memory_space<vmem>>, %arg5: memref<1x64xf32, #tpu.memory_space<vmem>>, %arg6: memref<1x64xf32, #tpu.memory_space<vmem>>, %arg7: memref<1x128xf32, #tpu.memory_space<vmem>>, %arg8: memref<16x128xf32, #tpu.memory_space<vmem>>) attributes {dimension_semantics = [#tpu.dimension_semantics<parallel>, #tpu.dimension_semantics<parallel>, #tpu.dimension_semantics<arbitrary>], iteration_bounds = array<i64: 1, 1, 1>, scalar_prefetch = 0 : i64, scratch_operands = 0 : i64, tpu.core_type = #tpu.core_type<tc>, window_params = [{transform_indices = @transform_0, window_bounds = array<i64: 16, 64>}, {transform_indices = @transform_1, window_bounds = array<i64: 64, 128>}, {transform_indices = @transform_2, window_bounds = array<i64: 1, 64>}, {transform_indices = @transform_3, window_bounds = array<i64: 1, 64>}, {transform_indices = @transform_4, window_bounds = array<i64: 1, 128>}, {transform_indices = @transform_5, window_bounds = array<i64: 16, 128>}]} {
    %c0 = arith.constant 0 : index
    %c0_0 = arith.constant 0 : index
    %0 = vector.load %arg3[%c0, %c0_0] : memref<16x64xf32, #tpu.memory_space<vmem>>, vector<16x64xf32>
    %cst = arith.constant dense<0.000000e+00> : vector<16xf32>
    %1 = vector.multi_reduction <add>, %0, %cst [1] : vector<16x64xf32> to vector<16xf32>
    %2 = vector.shape_cast %1 : vector<16xf32> to vector<16x1xf32>
    %cst_1 = arith.constant 6.400000e+01 : f32
    %3 = vector.broadcast %cst_1 : f32 to vector<16x1xf32>
    %4 = arith.divf %2, %3 : vector<16x1xf32>
    %5 = vector.broadcast %4 : vector<16x1xf32> to vector<16x64xf32>
    %6 = arith.subf %0, %5 : vector<16x64xf32>
    %7 = arith.mulf %6, %6 : vector<16x64xf32>
    %cst_2 = arith.constant dense<0.000000e+00> : vector<16xf32>
    %8 = vector.multi_reduction <add>, %7, %cst_2 [1] : vector<16x64xf32> to vector<16xf32>
    %9 = vector.shape_cast %8 : vector<16xf32> to vector<16x1xf32>
    %cst_3 = arith.constant 0.0158730168 : f32
    %10 = vector.broadcast %cst_3 : f32 to vector<16x1xf32>
    %11 = arith.mulf %9, %10 : vector<16x1xf32>
    %c0_4 = arith.constant 0 : index
    %c0_5 = arith.constant 0 : index
    %12 = vector.load %arg5[%c0_4, %c0_5] : memref<1x64xf32, #tpu.memory_space<vmem>>, vector<1x64xf32>
    %13 = vector.broadcast %12 : vector<1x64xf32> to vector<16x64xf32>
    %14 = arith.mulf %13, %6 : vector<16x64xf32>
    %15 = math.sqrt %11 : vector<16x1xf32>
    %cst_6 = arith.constant 9.99999997E-7 : f32
    %16 = vector.broadcast %cst_6 : f32 to vector<16x1xf32>
    %17 = arith.addf %15, %16 : vector<16x1xf32>
    %18 = vector.broadcast %17 : vector<16x1xf32> to vector<16x64xf32>
    %19 = arith.divf %14, %18 : vector<16x64xf32>
    %c0_7 = arith.constant 0 : index
    %c0_8 = arith.constant 0 : index
    %20 = vector.load %arg6[%c0_7, %c0_8] : memref<1x64xf32, #tpu.memory_space<vmem>>, vector<1x64xf32>
    %21 = vector.broadcast %20 : vector<1x64xf32> to vector<16x64xf32>
    %22 = arith.addf %19, %21 : vector<16x64xf32>
    %c0_9 = arith.constant 0 : index
    %c0_10 = arith.constant 0 : index
    %23 = vector.load %arg4[%c0_9, %c0_10] : memref<64x128xf32, #tpu.memory_space<vmem>>, vector<64x128xf32>
    %cst_11 = arith.constant dense<0.000000e+00> : vector<16x128xf32>
    %24 = tpu.matmul %22, %23, %cst_11 {dimension_numbers = #tpu.dot_dimension_numbers<[1], [0], [0], [1], [0, 0, 1, 1], [], []>} : vector<16x64xf32>, vector<64x128xf32>, vector<16x128xf32> -> vector<16x128xf32>
    %c0_12 = arith.constant 0 : index
    %c0_13 = arith.constant 0 : index
    %25 = vector.load %arg7[%c0_12, %c0_13] : memref<1x128xf32, #tpu.memory_space<vmem>>, vector<1x128xf32>
    %26 = vector.broadcast %25 : vector<1x128xf32> to vector<16x128xf32>
    %27 = arith.addf %24, %26 : vector<16x128xf32>
    %cst_14 = arith.constant 0.000000e+00 : f32
    %28 = vector.broadcast %cst_14 : f32 to vector<16x128xf32>
    %29 = arith.maximumf %27, %28 : vector<16x128xf32>
    %c0_15 = arith.constant 0 : index
    %c0_16 = arith.constant 0 : index
    %30 = vector.load %arg8[%c0_15, %c0_16] : memref<16x128xf32, #tpu.memory_space<vmem>>, vector<16x128xf32>
    tpu.vector_store %arg8[%c0_15, %c0_16], %29 {strides = array<i32>} : memref<16x128xf32, #tpu.memory_space<vmem>>, vector<16x128xf32>,
    return
  }
  func.func @transform_0(%arg0: i32, %arg1: i32, %arg2: i32) -> (i32, i32) {
    %c0_i32 = arith.constant 0 : i32
    return %arg0, %arg2 : i32, i32
  }
  func.func @transform_1(%arg0: i32, %arg1: i32, %arg2: i32) -> (i32, i32) {
    %c0_i32 = arith.constant 0 : i32
    return %arg2, %arg1 : i32, i32
  }
  func.func @transform_2(%arg0: i32, %arg1: i32, %arg2: i32) -> (i32, i32) {
    %c0_i32 = arith.constant 0 : i32
    %c0_i32_0 = arith.constant 0 : i32
    return %c0_i32, %arg2 : i32, i32
  }
  func.func @transform_3(%arg0: i32, %arg1: i32, %arg2: i32) -> (i32, i32) {
    %c0_i32 = arith.constant 0 : i32
    %c0_i32_0 = arith.constant 0 : i32
    return %c0_i32, %arg2 : i32, i32
  }
  func.func @transform_4(%arg0: i32, %arg1: i32, %arg2: i32) -> (i32, i32) {
    %c0_i32 = arith.constant 0 : i32
    %c0_i32_0 = arith.constant 0 : i32
    return %c0_i32, %arg1 : i32, i32
  }
  func.func @transform_5(%arg0: i32, %arg1: i32, %arg2: i32) -> (i32, i32) {
    %c0_i32 = arith.constant 0 : i32
    return %arg0, %arg1 : i32, i32
  }
}

module attributes {stable_mosaic.version = 11 : i64} {
  func.func @kernel(%arg0: i32, %arg1: i32, %arg2: i32, %arg3: memref<16x128xf32, #tpu.memory_space<vmem>>, %arg4: memref<128x64xf32, #tpu.memory_space<vmem>>, %arg5: memref<1x64xf32, #tpu.memory_space<vmem>>, %arg6: memref<16x64xf32, #tpu.memory_space<vmem>>, %arg7: memref<16x64xf32, #tpu.memory_space<vmem>>) attributes {dimension_semantics = [#tpu.dimension_semantics<parallel>, #tpu.dimension_semantics<parallel>, #tpu.dimension_semantics<arbitrary>], iteration_bounds = array<i64: 1, 1, 1>, scalar_prefetch = 0 : i64, scratch_operands = 0 : i64, tpu.core_type = #tpu.core_type<tc>, window_params = [{transform_indices = @transform_0, window_bounds = array<i64: 16, 128>}, {transform_indices = @transform_1, window_bounds = array<i64: 128, 64>}, {transform_indices = @transform_2, window_bounds = array<i64: 1, 64>}, {transform_indices = @transform_3, window_bounds = array<i64: 16, 64>}, {transform_indices = @transform_4, window_bounds = array<i64: 16, 64>}]} {
    %c0 = arith.constant 0 : index
    %c0_0 = arith.constant 0 : index
    %0 = vector.load %arg3[%c0, %c0_0] : memref<16x128xf32, #tpu.memory_space<vmem>>, vector<16x128xf32>
    %c0_1 = arith.constant 0 : index
    %c0_2 = arith.constant 0 : index
    %1 = vector.load %arg4[%c0_1, %c0_2] : memref<128x64xf32, #tpu.memory_space<vmem>>, vector<128x64xf32>
    %cst = arith.constant dense<0.000000e+00> : vector<16x64xf32>
    %2 = tpu.matmul %0, %1, %cst {dimension_numbers = #tpu.dot_dimension_numbers<[1], [0], [0], [1], [0, 0, 1, 1], [], []>} : vector<16x128xf32>, vector<128x64xf32>, vector<16x64xf32> -> vector<16x64xf32>
    %c0_3 = arith.constant 0 : index
    %c0_4 = arith.constant 0 : index
    %3 = vector.load %arg5[%c0_3, %c0_4] : memref<1x64xf32, #tpu.memory_space<vmem>>, vector<1x64xf32>
    %4 = vector.broadcast %3 : vector<1x64xf32> to vector<16x64xf32>
    %5 = arith.addf %2, %4 : vector<16x64xf32>
    %c0_5 = arith.constant 0 : index
    %c0_6 = arith.constant 0 : index
    %6 = vector.load %arg6[%c0_5, %c0_6] : memref<16x64xf32, #tpu.memory_space<vmem>>, vector<16x64xf32>
    %7 = arith.addf %5, %6 : vector<16x64xf32>
    %c0_7 = arith.constant 0 : index
    %c0_8 = arith.constant 0 : index
    %8 = vector.load %arg7[%c0_7, %c0_8] : memref<16x64xf32, #tpu.memory_space<vmem>>, vector<16x64xf32>
    tpu.vector_store %arg7[%c0_7, %c0_8], %7 {strides = array<i32>} : memref<16x64xf32, #tpu.memory_space<vmem>>, vector<16x64xf32>,
    return
  }
  func.func @transform_0(%arg0: i32, %arg1: i32, %arg2: i32) -> (i32, i32) {
    %c0_i32 = arith.constant 0 : i32
    return %arg0, %arg2 : i32, i32
  }
  func.func @transform_1(%arg0: i32, %arg1: i32, %arg2: i32) -> (i32, i32) {
    %c0_i32 = arith.constant 0 : i32
    return %arg2, %arg1 : i32, i32
  }
  func.func @transform_2(%arg0: i32, %arg1: i32, %arg2: i32) -> (i32, i32) {
    %c0_i32 = arith.constant 0 : i32
    %c0_i32_0 = arith.constant 0 : i32
    return %c0_i32, %arg1 : i32, i32
  }
  func.func @transform_3(%arg0: i32, %arg1: i32, %arg2: i32) -> (i32, i32) {
    %c0_i32 = arith.constant 0 : i32
    return %arg0, %arg1 : i32, i32
  }
  func.func @transform_4(%arg0: i32, %arg1: i32, %arg2: i32) -> (i32, i32) {
    %c0_i32 = arith.constant 0 : i32
    return %arg0, %arg1 : i32, i32
  }
}

</mosaic_0001>

<bundles_post_ra>
// kernel: decoder_block_forward.9
= control target key start
LH: loop header
LB: loop body
LE: loop exit
PB: predicated region body
PF: predicated region fallthrough
CT: control target
= control target key end

     0   :  { %vm19_vm0 = vcmask 523264   ;;  %v215_v30 = vmov 0.0   ;;  %s331_s0 = inlined_call_operand.vmem [shape: f32[16,64], index: 0, kind: input, shape index: {}]   ;;  %s332_s1 = inlined_call_operand.vmem [shape: f32[64,192], index: 1, kind: input, shape index: {}]   ;;  %s333_s2 = inlined_call_operand.vmem [shape: f32[1,64], index: 2, kind: input, shape index: {}]   ;;  %s334_s3 = inlined_call_operand.vmem [shape: f32[1,64], index: 3, kind: input, shape index: {}]   ;;  %s335_s4 = inlined_call_operand.vmem [shape: f32[16,192], index: 4, kind: output, shape index: {}]  }
   0x1   :  { %v17_v0 = vld [vmem:[%s331_s0] sm:$0xff]  ;;  %v18_v1 = vld [vmem:[%s331_s0 + $0x8] sm:$0xff]  ;;  %v94_v14 = vld [vmem:[%s332_s1 + $0x78] sm:$0xff]  ;;  %165 = vmatprep.mubr.f32.mxu0 %v215_v30  ;;  %171 = vmatprep.mubr.f32.mxu1 %v215_v30 }
   0x2   :  { %v20_v2 = vsel %vm19_vm0, %v17_v0, 0.0  ;;  %v23_v3 = vsel %vm19_vm0, %v18_v1, 0.0  ;;  %117 = vmatprep.subr.mxu0 %v94_v14  ;;  %v93_v15 = vld [vmem:[%s332_s1 + $0x70] sm:$0xff]  ;;  %190 = vmatprep.subr.mxu1 %v94_v14  ;;  %v92_v16 = vld [vmem:[%s332_s1 + $0x68] sm:$0xff]  ;;  %v91_v17 = vld [vmem:[%s332_s1 + $0x60] sm:$0xff] }
   0x3   :  { %21 = vadd.xlane.f32.xlu0 %v20_v2  ;;  %118 = vmatpush1.msra.mxu0 %v93_v15  ;;  %v90_v18 = vld [vmem:[%s332_s1 + $0x58] sm:$0xff]  ;;  %v89_v19 = vld [vmem:[%s332_s1 + $0x50] sm:$0xff]  ;;  %v88_v20 = vld [vmem:[%s332_s1 + $0x48] sm:$0xff] }
   0x4   :  { %198 = vmatpush1.msra.mxu1 %v93_v15  ;;  %119 = vmatprep.subr.mxu0 %v92_v16  ;;  %v87_v21 = vld [vmem:[%s332_s1 + $0x40] sm:$0xff]  ;;  %v86_v22 = vld [vmem:[%s332_s1 + $0x38] sm:$0xff]  ;;  %v85_v23 = vld [vmem:[%s332_s1 + $0x30] sm:$0xff] }
   0x5   :  { %191 = vmatprep.subr.mxu1 %v92_v16  ;;  %120 = vmatpush1.msra.mxu0 %v91_v17  ;;  %v84_v24 = vld [vmem:[%s332_s1 + $0x28] sm:$0xff]  ;;  %v83_v25 = vld [vmem:[%s332_s1 + $0x20] sm:$0xff]  ;;  %v82_v26 = vld [vmem:[%s332_s1 + $0x18] sm:$0xff] }
   0x6   :  { %199 = vmatpush1.msra.mxu1 %v91_v17  ;;  %121 = vmatprep.subr.mxu0 %v90_v18  ;;  %v81_v27 = vld [vmem:[%s332_s1 + $0x10] sm:$0xff]  ;;  %v80_v28 = vld [vmem:[%s332_s1 + $0x8] sm:$0xff]  ;;  %v79_v29 = vld [vmem:[%s332_s1] sm:$0xff] }
   0x7   :  { %24 = vadd.xlane.f32.xlu0 %v23_v3  ;;  %192 = vmatprep.subr.mxu1 %v90_v18  ;;  %v186_v47 = vld [vmem:[%s333_s2] ss:$0 sm:$0xff] }
   0x8   :  { %122 = vmatpush1.msra.mxu0 %v89_v19  ;;  %200 = vmatpush1.msra.mxu1 %v89_v19  ;;  %v187_v50 = vld [vmem:[%s334_s3] ss:$0 sm:$0xff] }
   0x9   :  { %123 = vmatprep.subr.mxu0 %v88_v20  ;;  %193 = vmatprep.subr.mxu1 %v88_v20 }
   0xa   :  { %124 = vmatpush1.msra.mxu0 %v87_v21  ;;  %201 = vmatpush1.msra.mxu1 %v87_v21 }
   0xb   :  { %125 = vmatprep.subr.mxu0 %v86_v22  ;;  %194 = vmatprep.subr.mxu1 %v86_v22 }
   0xc   :  { %126 = vmatpush1.msra.mxu0 %v85_v23  ;;  %202 = vmatpush1.msra.mxu1 %v85_v23 }
   0xd   :  { %127 = vmatprep.subr.mxu0 %v84_v24  ;;  %195 = vmatprep.subr.mxu1 %v84_v24 }
   0xe   :  { %128 = vmatpush1.msra.mxu0 %v83_v25  ;;  %203 = vmatpush1.msra.mxu1 %v83_v25 }
   0xf   :  { %129 = vmatprep.subr.mxu0 %v82_v26  ;;  %196 = vmatprep.subr.mxu1 %v82_v26 }
  0x10   :  { %130 = vmatpush1.msra.mxu0 %v81_v27  ;;  %204 = vmatpush1.msra.mxu1 %v81_v27 }
  0x11   :  { %131 = vmatprep.subr.mxu0 %v80_v28  ;;  %197 = vmatprep.subr.mxu1 %v80_v28 }
  0x12   :  { %132 = vmatpush1.msra.mxu0 %v79_v29  ;;  %205 = vmatpush1.msra.mxu1 %v79_v29 }
  0x8c   :  { %v22_v4 = vpop.xlane.xlu0 %21 }
  0x8d   :  { %v27_v5 = vmul.f32 0.015625, %v22_v4 }
  0x8f   :  { %v249_v6 = vsub.f32 %v17_v0, %v27_v5 }
  0x90   :  { %v25_v7 = vpop.xlane.xlu0 %24 }
  0x91   :  { %v28_v8 = vmul.f32 0.015625, %v25_v7  ;;  %v31_v9 = vmul.f32 %v249_v6, %v249_v6  ;;  %v48_v48 = vmul.f32 %v186_v47, %v249_v6 }
  0x93   :  { %v253_v10 = vsub.f32 %v18_v1, %v28_v8  ;;  %v33_v11 = vsel %vm19_vm0, %v31_v9, 0.0 }
  0x94   :  { %34 = vadd.xlane.f32.xlu1 %v33_v11 }
  0x95   :  { %v32_v12 = vmul.f32 %v253_v10, %v253_v10  ;;  %v49_v52 = vmul.f32 %v186_v47, %v253_v10 }
  0x97   :  { %v36_v13 = vsel %vm19_vm0, %v32_v12, 0.0 }
  0x98   :  { %37 = vadd.xlane.f32.xlu1 %v36_v13 }
 0x11d   :  { %v35_v31 = vpop.xlane.xlu1 %34 }
 0x11e   :  { %v39_v32 = vmul.f32 0.015873017, %v35_v31 }
 0x120   :  { %207 = vrsqrt.f32 %v39_v32  ;;  %vm52_vm1 = vcmp.eq.f32.partialorder %v39_v32, inf  ;;  %v55_v37 = vand.u32 2147483648, %v39_v32  ;;  %vm54_vm2 = vcmp.eq.f32.partialorder %v39_v32, 0.0 }
 0x121   :  { %v38_v33 = vpop.xlane.xlu1 %37 }
 0x122   :  { %v40_v34 = vmul.f32 0.015873017, %v38_v33 }
 0x124   :  { %209 = vrsqrt.f32 %v40_v34  ;;  %vm59_vm3 = vcmp.eq.f32.partialorder %v40_v34, inf  ;;  %v62_v43 = vand.u32 2147483648, %v40_v34  ;;  %vm61_vm4 = vcmp.eq.f32.partialorder %v40_v34, 0.0 }
 0x12d   :  { %v208_v35 = vpop.eup %207 }
 0x12e   :  { %v51_v36 = vmul.f32 %v208_v35, %v39_v32 }
 0x130   :  { %v53_v38 = vsel %vm52_vm1, %v39_v32, %v51_v36 }
 0x131   :  { %v210_v39 = vpop.eup %209  ;;  %v56_v40 = vsel %vm54_vm2, %v55_v37, %v53_v38 }
 0x132   :  { %v64_v41 = vadd.f32 1e-06, %v56_v40  ;;  %v58_v42 = vmul.f32 %v210_v39, %v40_v34 }
 0x134   :  { %211 = vrcp.f32 %v64_v41  ;;  %v60_v44 = vsel %vm59_vm3, %v40_v34, %v58_v42 }
 0x135   :  { %v63_v45 = vsel %vm61_vm4, %v62_v43, %v60_v44 }
 0x136   :  { %v65_v46 = vadd.f32 1e-06, %v63_v45 }
 0x138   :  { %213 = vrcp.f32 %v65_v46 }
 0x141   :  { %v212_v49 = vpop.eup %211 }
 0x142   :  { %v67_v51 = vmul.f32 %v212_v49, %v48_v48 }
 0x144   :  { %v77_v53 = vadd.f32 %v187_v50, %v67_v51 }
 0x145   :  { %v214_v54 = vpop.eup %213 }
 0x146   :  { %188 = vmatmul.mubr.msk.f32.vlgmr.msra.gmra.mxu0 %vm19_vm0, %v77_v53  ;;  %v69_v55 = vmul.f32 %v214_v54, %v49_v52 }
 0x148   :  { %v78_v56 = vadd.f32 %v187_v50, %v69_v55 }
 0x14a   :  { %189 = vmatmul.mubr.msk.f32.vlgmr.msra.gmra.mxu1 %vm19_vm0, %v78_v56 }
 0x206   :  { %v167_v57 = vpop.f32.mrf.mxu0 }
 0x207   :  { %178 = vst [vmem:[%s335_s4] sm:$0xff] %v167_v57 }
 0x208   :  { %v169_v58 = vpop.f32.mrf.mxu0 }
 0x209   :  { %179 = vst.msk [vmem:[%s335_s4 + $0x8] sm:$0xff] %vm19_vm0, %v169_v58 }
 0x20a   :  { %v173_v59 = vpop.f32.mrf.mxu1 }
 0x20b   :  { %180 = vst [vmem:[%s335_s4 + $0x10] sm:$0xff] %v173_v59 }
 0x20c   :  { %v175_v60 = vpop.f32.mrf.mxu1 }
 0x20d   :  { %181 = vst.msk [vmem:[%s335_s4 + $0x18] sm:$0xff] %vm19_vm0, %v175_v60 }

// kernel: decoder_block_forward.11
= control target key start
LH: loop header
LB: loop body
LE: loop exit
PB: predicated region body
PF: predicated region fallthrough
CT: control target
= control target key end

     0   :  { %vm26_vm0 = vcmask 523264   ;;  %s211_s1 = inlined_call_operand.vmem [shape: f32[64,64], index: 1, kind: input, shape index: {}]   ;;  %s212_s0 = inlined_call_operand.vmem [shape: f32[16,64], index: 0, kind: input, shape index: {}]   ;;  %s213_s2 = inlined_call_operand.vmem [shape: f32[16,64], index: 2, kind: input, shape index: {}]   ;;  %s214_s3 = inlined_call_operand.vmem [shape: f32[16,64], index: 3, kind: output, shape index: {}]  }
   0x1   :  { %v23_v0 = vld [vmem:[%s211_s1 + $0x38] sm:$0xff]  ;;  %v22_v1 = vld [vmem:[%s211_s1 + $0x30] sm:$0xff]  ;;  %v21_v2 = vld [vmem:[%s211_s1 + $0x28] sm:$0xff] }
   0x2   :  { %126 = vmatprep.subr.mxu0 %v23_v0  ;;  %v14_v3 = vld [vmem:[%s212_s0] sm:$0xff]  ;;  %v19_v5 = vld [vmem:[%s211_s1 + $0x18] sm:$0xff]  ;;  %v18_v6 = vld [vmem:[%s211_s1 + $0x10] sm:$0xff] }
   0x3   :  { %127 = vmatpush3.msra.mxu0 %v23_v0  ;;  %142 = vmatprep.mubr.msk.f32.mxu0 %vm26_vm0, %v14_v3  ;;  %v20_v4 = vld [vmem:[%s211_s1 + $0x20] sm:$0xff]  ;;  %v17_v7 = vld [vmem:[%s211_s1 + $0x8] sm:$0xff] }
   0x4   :  { %128 = vmatprep.subr.mxu0 %v22_v1  ;;  %v16_v8 = vld [vmem:[%s211_s1] sm:$0xff]  ;;  %v15_v9 = vld [vmem:[%s212_s0 + $0x8] sm:$0xff] }
   0x5   :  { %129 = vmatpush3.msra.mxu0 %v22_v1  ;;  %v25_v10 = vld [vmem:[%s213_s2 + $0x8] sm:$0xff]  ;;  %v24_v12 = vld [vmem:[%s213_s2] sm:$0xff] }
   0x6   :  { %130 = vmatprep.subr.mxu0 %v21_v2 }
   0x7   :  { %131 = vmatpush3.msra.mxu0 %v21_v2 }
   0x8   :  { %132 = vmatprep.subr.mxu0 %v20_v4 }
   0x9   :  { %133 = vmatpush3.msra.mxu0 %v20_v4 }
   0xa   :  { %134 = vmatprep.subr.mxu0 %v19_v5 }
   0xb   :  { %135 = vmatpush3.msra.mxu0 %v19_v5 }
   0xc   :  { %136 = vmatprep.subr.mxu0 %v18_v6 }
   0xd   :  { %137 = vmatpush3.msra.mxu0 %v18_v6 }
   0xe   :  { %138 = vmatprep.subr.mxu0 %v17_v7 }
   0xf   :  { %139 = vmatpush3.msra.mxu0 %v17_v7 }
  0x10   :  { %140 = vmatprep.subr.mxu0 %v16_v8 }
  0x11   :  { %141 = vmatpush3.msra.mxu0 %v16_v8 }
  0x12   :  { %143 = vmatmul.mubr.msk.f32.vlgmr.msra.gmra.mxu0 %vm26_vm0, %v15_v9 }
  0xd2   :  { %v144_v11 = vpop.f32.mrf.mxu0 }
  0xd3   :  { %v105_v13 = vadd.f32 %v144_v11, %v25_v10 }
  0xd4   :  { %v99_v14 = vpop.f32.mrf.mxu0 }
  0xd5   :  { %109 = vst.msk [vmem:[%s214_s3 + $0x8] sm:$0xff] %vm26_vm0, %v105_v13  ;;  %v100_v15 = vadd.f32 %v99_v14, %v24_v12 }
  0xd7   :  { %108 = vst.msk [vmem:[%s214_s3] sm:$0xff] %vm26_vm0, %v100_v15 }

// kernel: decoder_block_forward.12
= control target key start
LH: loop header
LB: loop body
LE: loop exit
PB: predicated region body
PF: predicated region fallthrough
CT: control target
= control target key end

     0   :  { %vm19_vm0 = vcmask 523264   ;;  %s290_s0 = inlined_call_operand.vmem [shape: f32[16,64], index: 0, kind: input, shape index: {}]   ;;  %s291_s1 = inlined_call_operand.vmem [shape: f32[64,64], index: 1, kind: input, shape index: {}]   ;;  %s292_s2 = inlined_call_operand.vmem [shape: f32[1,64], index: 2, kind: input, shape index: {}]   ;;  %s293_s3 = inlined_call_operand.vmem [shape: f32[1,64], index: 3, kind: input, shape index: {}]   ;;  %s294_s4 = inlined_call_operand.vmem [shape: f32[16,64], index: 4, kind: output, shape index: {}]  }
   0x1   :  { %v17_v0 = vld [vmem:[%s290_s0] sm:$0xff]  ;;  %v18_v1 = vld [vmem:[%s290_s0 + $0x8] sm:$0xff]  ;;  %v86_v14 = vld [vmem:[%s291_s1 + $0x38] sm:$0xff] }
   0x2   :  { %v20_v2 = vsel %vm19_vm0, %v17_v0, 0.0  ;;  %v23_v3 = vsel %vm19_vm0, %v18_v1, 0.0  ;;  %v85_v15 = vld [vmem:[%s291_s1 + $0x30] sm:$0xff]  ;;  %188 = vmatprep.subr.mxu0 %v86_v14  ;;  %v84_v16 = vld [vmem:[%s291_s1 + $0x28] sm:$0xff]  ;;  %v83_v17 = vld [vmem:[%s291_s1 + $0x20] sm:$0xff] }
   0x3   :  { %21 = vadd.xlane.f32.xlu0 %v20_v2  ;;  %189 = vmatpush3.msra.mxu0 %v86_v14  ;;  %v82_v18 = vld [vmem:[%s291_s1 + $0x18] sm:$0xff]  ;;  %v81_v19 = vld [vmem:[%s291_s1 + $0x10] sm:$0xff]  ;;  %v80_v20 = vld [vmem:[%s291_s1 + $0x8] sm:$0xff] }
   0x4   :  { %190 = vmatprep.subr.mxu0 %v85_v15  ;;  %v79_v21 = vld [vmem:[%s291_s1] sm:$0xff] }
   0x5   :  { %191 = vmatpush3.msra.mxu0 %v85_v15  ;;  %v174_v38 = vld [vmem:[%s292_s2] ss:$0 sm:$0xff] }
   0x6   :  { %192 = vmatprep.subr.mxu0 %v84_v16  ;;  %v175_v41 = vld [vmem:[%s293_s3] ss:$0 sm:$0xff] }
   0x7   :  { %24 = vadd.xlane.f32.xlu0 %v23_v3  ;;  %193 = vmatpush3.msra.mxu0 %v84_v16 }
   0x8   :  { %194 = vmatprep.subr.mxu0 %v83_v17 }
   0x9   :  { %195 = vmatpush3.msra.mxu0 %v83_v17 }
   0xa   :  { %196 = vmatprep.subr.mxu0 %v82_v18 }
   0xb   :  { %197 = vmatpush3.msra.mxu0 %v82_v18 }
   0xc   :  { %198 = vmatprep.subr.mxu0 %v81_v19 }
   0xd   :  { %199 = vmatpush3.msra.mxu0 %v81_v19 }
   0xe   :  { %200 = vmatprep.subr.mxu0 %v80_v20 }
   0xf   :  { %201 = vmatpush3.msra.mxu0 %v80_v20 }
  0x10   :  { %202 = vmatprep.subr.mxu0 %v79_v21 }
  0x11   :  { %203 = vmatpush3.msra.mxu0 %v79_v21 }
  0x8c   :  { %v22_v4 = vpop.xlane.xlu0 %21 }
  0x8d   :  { %v27_v5 = vmul.f32 0.015625, %v22_v4 }
  0x8f   :  { %v29_v6 = vsub.f32 %v17_v0, %v27_v5 }
  0x90   :  { %v25_v7 = vpop.xlane.xlu0 %24 }
  0x91   :  { %v28_v8 = vmul.f32 0.015625, %v25_v7  ;;  %v31_v9 = vmul.f32 %v29_v6, %v29_v6  ;;  %v48_v39 = vmul.f32 %v174_v38, %v29_v6 }
  0x93   :  { %v30_v10 = vsub.f32 %v18_v1, %v28_v8  ;;  %v33_v11 = vsel %vm19_vm0, %v31_v9, 0.0 }
  0x94   :  { %34 = vadd.xlane.f32.xlu1 %v33_v11 }
  0x95   :  { %v32_v12 = vmul.f32 %v30_v10, %v30_v10  ;;  %v49_v43 = vmul.f32 %v174_v38, %v30_v10 }
  0x97   :  { %v36_v13 = vsel %vm19_vm0, %v32_v12, 0.0 }
  0x98   :  { %37 = vadd.xlane.f32.xlu1 %v36_v13 }
 0x11d   :  { %v35_v22 = vpop.xlane.xlu1 %34 }
 0x11e   :  { %v39_v23 = vmul.f32 0.015873017, %v35_v22 }
 0x120   :  { %207 = vrsqrt.f32 %v39_v23  ;;  %vm52_vm1 = vcmp.eq.f32.partialorder %v39_v23, inf  ;;  %v55_v28 = vand.u32 2147483648, %v39_v23  ;;  %vm54_vm2 = vcmp.eq.f32.partialorder %v39_v23, 0.0 }
 0x121   :  { %v38_v24 = vpop.xlane.xlu1 %37 }
 0x122   :  { %v40_v25 = vmul.f32 0.015873017, %v38_v24 }
 0x124   :  { %209 = vrsqrt.f32 %v40_v25  ;;  %vm59_vm3 = vcmp.eq.f32.partialorder %v40_v25, inf  ;;  %v62_v34 = vand.u32 2147483648, %v40_v25  ;;  %vm61_vm4 = vcmp.eq.f32.partialorder %v40_v25, 0.0 }
 0x12d   :  { %v208_v26 = vpop.eup %207 }
 0x12e   :  { %v51_v27 = vmul.f32 %v208_v26, %v39_v23 }
 0x130   :  { %v53_v29 = vsel %vm52_vm1, %v39_v23, %v51_v27 }
 0x131   :  { %v210_v30 = vpop.eup %209  ;;  %v56_v31 = vsel %vm54_vm2, %v55_v28, %v53_v29 }
 0x132   :  { %v58_v32 = vmul.f32 %v210_v30, %v40_v25  ;;  %v64_v33 = vadd.f32 1e-06, %v56_v31 }
 0x134   :  { %v60_v35 = vsel %vm59_vm3, %v40_v25, %v58_v32  ;;  %211 = vrcp.f32 %v64_v33 }
 0x135   :  { %v63_v36 = vsel %vm61_vm4, %v62_v34, %v60_v35 }
 0x136   :  { %v65_v37 = vadd.f32 1e-06, %v63_v36 }
 0x138   :  { %213 = vrcp.f32 %v65_v37 }
 0x141   :  { %v212_v40 = vpop.eup %211 }
 0x142   :  { %v67_v42 = vmul.f32 %v212_v40, %v48_v39 }
 0x144   :  { %v77_v44 = vadd.f32 %v175_v41, %v67_v42 }
 0x145   :  { %v214_v45 = vpop.eup %213 }
 0x146   :  { %v69_v46 = vmul.f32 %v214_v45, %v49_v43  ;;  %204 = vmatprep.mubr.msk.f32.mxu0 %vm19_vm0, %v77_v44 }
 0x148   :  { %v78_v47 = vadd.f32 %v175_v41, %v69_v46 }
 0x14a   :  { %205 = vmatmul.mubr.msk.f32.vlgmr.msra.gmra.mxu0 %vm19_vm0, %v78_v47 }
 0x20a   :  { %v206_v48 = vpop.f32.mrf.mxu0 }
 0x20b   :  { %169 = vst.msk [vmem:[%s294_s4 + $0x8] sm:$0xff] %vm19_vm0, %v206_v48 }
 0x20c   :  { %v159_v49 = vpop.f32.mrf.mxu0 }
 0x20d   :  { %168 = vst.msk [vmem:[%s294_s4] sm:$0xff] %vm19_vm0, %v159_v49 }

// kernel: decoder_block_forward.10
= control target key start
LH: loop header
LB: loop body
LE: loop exit
PB: predicated region body
PF: predicated region fallthrough
CT: control target
= control target key end

     0   :  { %s1029_s9 = smov 0   ;;  %s1134_s0 = inlined_call_operand.vmem [shape: f32[2,8,192], index: 0, kind: input, shape index: {}]   ;;  %s1135_s1 = inlined_call_operand.vmem [shape: s32[1,1,8,8], index: 1, kind: input, shape index: {}]   ;;  %s1136_s2 = inlined_call_operand.vmem [shape: f32[2,8,64], index: 2, kind: output, shape index: {}]  }
   0x1 LB: > { %s885_s10 = sadd.s32 4294967295, %s1003_s9   ;;  %p889_p0 = scmp.ge.s32.totalorder %s1003_s9, 1  ;;  %s1003_s9 = sphi %s1029_s9, %s12_s9  }
   0x2   : > { %p112_p1 = scmp.lt.s32.totalorder %s1003_s9, 3 }
   0x4   : > { %p113_p2 = pnand %p889_p0, %p112_p1 }
   0x5   : > { %p133_p3 = scmp.lt.s32.totalorder (!%p113_p2), %s885_s10, 1  ;;  %s1007_s15 = smov (!%p113_p2), 64  }
   0x6   : > { %116 = sbr.rel (%p113_p2) target bundleno = 1471 (0x5bf), region = 28  ;;  %s1008_s16 = smov (!%p113_p2), 48  }
   0x7   : > { %s1009_s17 = smov (!%p113_p2), 112   ;;  %s1010_s18 = smov (!%p113_p2), 32  }
   0x8   : > { %s1011_s21 = smov (!%p113_p2), 80   ;;  %s1012_s22 = smov (!%p113_p2), 96  }
   0x9   : > { %s1013_s23 = smov (!%p113_p2), 16  }
   0xb   : > { %v1005_v0 = vmov 0.0   ;;  %vm1006_vm0 = vmmov 0   ;;  %s1138_s10 = smov (!%p133_p3, %s885_s10), 1  ;;  %vm148_vm1 = vcmask 130048   ;;  %v1063_v3 = vld [vmem:[%s1135_s1] sm:$0xff]  ;;  %vm226_vm3 = vcmask 64512  }
   0xc   : > { %924 = vmatprep.subr.mxu0 %v1005_v0  ;;  %926 = vmatprep.mubr.msk.f32.mxu0 %vm1006_vm0, %v1005_v0  ;;  %s907_s11 = sshll.u32 %s1138_s10, 4  ;;  %vm224_vm2 = vcmp.eq.s32.totalorder %v1063_v3, 0  ;;  %s892_s24 = sshll.u32 %s1138_s10, 3  ;;  %vm826_vm4 = vcmask 261120   ;;  %vm828_vm5 = vcmask 392192   ;;  %vm830_vm6 = vcmask 523264  }
   0xd   : > { %929 = vmatprep.subr.mxu1 %v1005_v0  ;;  %931 = vmatprep.mubr.msk.f32.mxu1 %vm1006_vm0, %v1005_v0  ;;  %s1049_s14 = scalar_lea.vmem %s1134_s0, %s907_s11  ;;  %s141_s27 = scalar_lea.vmem %s1136_s2, %s892_s24 }
   0xe   : > { %v142_v1 = vld [vmem:[%s1049_s14] sm:$0xff]  ;;  %v1072_v14 = vld [vmem:[%s1049_s14 + $0x8] sm:$0xff] }
   0xf   : > { %146 = vrot.lane.b32.xlu0 %v142_v1, %s1007_s15  ;;  %313 = vrot.lane.b32.xlu1 %v142_v1, %s1008_s16 }
  0x10   : > { %930 = vmatpush3.msra.mxu1 %v1072_v14 }
  0x11   : > { %934 = vmatprep.subr.mxu1 %v1005_v0 }
  0x13   : > { %311 = vrot.lane.b32.xlu1 %v142_v1, %s1009_s17 }
  0x17   : > { %481 = vrot.lane.b32.xlu1 %v142_v1, %s1010_s18 }
  0x81   : > { %v147_v2 = vpop.permute.xlu0 %146  ;;  %v314_v15 = vpop.permute.xlu1 %313 }
  0x82   : > { %925 = vmatpush3.xpose.msk.msra.mxu0 %vm148_vm1, %v147_v2 }
  0x83   : > { %939 = vmatprep.subr.mxu0 %v1005_v0 }
  0x85   : > { %927 = vmatmul.mubr.msk.f32.vlgmr.msra.gmra.mxu0 %vm148_vm1, %v142_v1  ;;  %v312_v16 = vpop.permute.xlu1 %311 }
  0x86   : > { %941 = vmatprep.mubr.msk.f32.mxu0 %vm1006_vm0, %v1005_v0 }
  0x89   : > { %v482_v17 = vpop.permute.xlu1 %481 }
 0x145   : > { %v219_v4 = vpop.f32.mrf.mxu0 }
 0x146   : > { %v223_v5 = vmul.f32 0.25, %v219_v4 }
 0x147   : > { %v928_v6 = vpop.f32.mrf.mxu0 }
 0x148   : > { %v225_v7 = vsel %vm224_vm2, -1e+09, %v223_v5 }
 0x149   : > { %v227_v8 = vsel %vm226_vm3, %v225_v7, -inf }
 0x14a   : > { %228 = vmax.xlane.f32.xlu0 %v227_v8 }
 0x160   : > { %646 = vrot.lane.b32.xlu0 %v142_v1, %s1011_s21 }
 0x1d3   : > { %v229_v9 = vpop.xlane.xlu0 %228 }
 0x1d4   : > { %v230_v10 = vsub.f32 %v225_v7, %v229_v9 }
 0x1d6   : > { %v231_v11 = vmul.f32 1.442695, %v230_v10 }
 0x1d7   : > { %v647_v23 = vpop.permute.xlu0 %646 }
 0x1d8   : > { %981 = vpow2.f32 %v231_v11 }
 0x1e5   : > { %v982_v12 = vpop.eup %981 }
 0x1e6   : > { %v233_v13 = vsel %vm226_vm3, %v982_v12, 0.0 }
 0x1e7   : > { %234 = vadd.xlane.f32.xlu1 %v233_v13 }
 0x1f8   : > { %479 = vrot.lane.b32.xlu1 %v142_v1, %s1012_s22 }
 0x1fc   : > { %648 = vrot.lane.b32.xlu1 %v142_v1, %s1013_s23 }
 0x270   : > { %v235_v18 = vpop.xlane.xlu1 %234 }
 0x271   : > { %983 = vrcp.f32 %v235_v18 }
 0x274   : > { %v480_v21 = vpop.permute.xlu1 %479 }
 0x278   : > { %v649_v22 = vpop.permute.xlu1 %648 }
 0x27e   : > { %v984_v19 = vpop.eup %983 }
 0x27f   : > { %v237_v20 = vmul.f32 %v984_v19, %v982_v12 }
 0x281   : > { %932 = vmatmul.mubr.msk.f32.vlgmr.msra.gmra.mxu1 %vm226_vm3, %v237_v20 }
 0x282   : > { %935 = vmatpush3.xpose.msk.msra.mxu1 %vm148_vm1, %v314_v15  ;;  %936 = vmatprep.mubr.msk.f32.mxu1 %vm1006_vm0, %v1005_v0 }
 0x283   : > { %944 = vmatprep.subr.mxu1 %v1005_v0 }
 0x285   : > { %937 = vmatmul.mubr.msk.f32.vlgmr.msra.gmra.mxu1 %vm148_vm1, %v312_v16 }
 0x286   : > { %945 = vmatpush3.xpose.msk.msra.mxu1 %vm148_vm1, %v482_v17  ;;  %946 = vmatprep.mubr.msk.f32.mxu1 %vm1006_vm0, %v1005_v0 }
 0x287   : > { %954 = vmatprep.subr.mxu1 %v1005_v0 }
 0x289   : > { %947 = vmatmul.mubr.msk.f32.vlgmr.msra.gmra.mxu1 %vm148_vm1, %v480_v21 }
 0x28a   : > { %955 = vmatpush3.xpose.msk.msra.mxu1 %vm148_vm1, %v649_v22  ;;  %956 = vmatprep.mubr.msk.f32.mxu1 %vm1006_vm0, %v1005_v0 }
 0x28d   : > { %957 = vmatmul.mubr.msk.f32.vlgmr.msra.gmra.mxu1 %vm148_vm1, %v647_v23 }
 0x341   : > { %v1093_v24 = vpop.f32.mrf.mxu1 }
 0x343   : > { %v933_v25 = vpop.f32.mrf.mxu1 }
 0x345   : > { %v385_v26 = vpop.f32.mrf.mxu1 }
 0x346   : > { %v389_v27 = vmul.f32 0.25, %v385_v26 }
 0x347   : > { %v938_v28 = vpop.f32.mrf.mxu1 }
 0x348   : > { %v390_v29 = vsel %vm224_vm2, -1e+09, %v389_v27 }
 0x349   : > { %v553_v30 = vpop.f32.mrf.mxu1  ;;  %v391_v31 = vsel %vm226_vm3, %v390_v29, -inf }
 0x34a   : > { %v557_v32 = vmul.f32 0.25, %v553_v30  ;;  %392 = vmax.xlane.f32.xlu1 %v391_v31 }
 0x34b   : > { %v948_v33 = vpop.f32.mrf.mxu1 }
 0x34c   : > { %v558_v34 = vsel %vm224_vm2, -1e+09, %v557_v32 }
 0x34d   : > { %v720_v35 = vpop.f32.mrf.mxu1  ;;  %v559_v36 = vsel %vm226_vm3, %v558_v34, -inf }
 0x34e   : > { %v724_v37 = vmul.f32 0.25, %v720_v35  ;;  %560 = vmax.xlane.f32.xlu0 %v559_v36 }
 0x34f   : > { %v958_v38 = vpop.f32.mrf.mxu1 }
 0x350   : > { %v725_v39 = vsel %vm224_vm2, -1e+09, %v724_v37 }
 0x351   : > { %v726_v40 = vsel %vm226_vm3, %v725_v39, -inf }
 0x352   : > { %727 = vmax.xlane.f32.xlu1 %v726_v40 }
 0x363   : > { %570 = vrot.lane.b32.xlu1 %v1072_v14, %s1012_s22 }
 0x364   : > { %403 = vrot.lane.b32.xlu0 %v1072_v14, %s1009_s17 }
 0x3d3   : > { %v393_v41 = vpop.xlane.xlu1 %392 }
 0x3d4   : > { %v394_v42 = vsub.f32 %v390_v29, %v393_v41 }
 0x3d6   : > { %v395_v43 = vmul.f32 1.442695, %v394_v42 }
 0x3d7   : > { %v561_v44 = vpop.xlane.xlu0 %560 }
 0x3d8   : > { %985 = vpow2.f32 %v395_v43  ;;  %v562_v45 = vsub.f32 %v558_v34, %v561_v44 }
 0x3da   : > { %v563_v46 = vmul.f32 1.442695, %v562_v45 }
 0x3db   : > { %v728_v47 = vpop.xlane.xlu1 %727  ;;  %v404_v56 = vpop.permute.xlu0 %403 }
 0x3dc   : > { %987 = vpow2.f32 %v563_v46  ;;  %v729_v48 = vsub.f32 %v725_v39, %v728_v47  ;;  %940 = vmatpush3.msra.mxu0 %v404_v56 }
 0x3dd   : > { %949 = vmatprep.subr.mxu0 %v1005_v0 }
 0x3de   : > { %v730_v49 = vmul.f32 1.442695, %v729_v48 }
 0x3df   : > { %v571_v57 = vpop.permute.xlu1 %570 }
 0x3e0   : > { %989 = vpow2.f32 %v730_v49 }
 0x3e5   : > { %v986_v50 = vpop.eup %985 }
 0x3e6   : > { %v397_v51 = vsel %vm226_vm3, %v986_v50, 0.0 }
 0x3e7   : > { %398 = vadd.xlane.f32.xlu1 %v397_v51 }
 0x3e9   : > { %v988_v52 = vpop.eup %987 }
 0x3ea   : > { %v565_v53 = vsel %vm226_vm3, %v988_v52, 0.0 }
 0x3eb   : > { %566 = vadd.xlane.f32.xlu1 %v565_v53 }
 0x3ed   : > { %v990_v54 = vpop.eup %989 }
 0x3ee   : > { %v732_v55 = vsel %vm226_vm3, %v990_v54, 0.0 }
 0x3ef   : > { %733 = vadd.xlane.f32.xlu1 %v732_v55 }
 0x400   : > { %737 = vrot.lane.b32.xlu1 %v1072_v14, %s1011_s21 }
 0x470   : > { %v399_v58 = vpop.xlane.xlu1 %398 }
 0x471   : > { %991 = vrcp.f32 %v399_v58 }
 0x474   : > { %v567_v59 = vpop.xlane.xlu1 %566 }
 0x475   : > { %993 = vrcp.f32 %v567_v59 }
 0x478   : > { %v734_v60 = vpop.xlane.xlu1 %733 }
 0x479   : > { %995 = vrcp.f32 %v734_v60 }
 0x47c   : > { %v738_v1 = vpop.permute.xlu1 %737 }
 0x47e   : > { %v992_v61 = vpop.eup %991 }
 0x47f   : > { %v401_v62 = vmul.f32 %v992_v61, %v986_v50 }
 0x481   : > { %942 = vmatmul.mubr.msk.f32.vlgmr.msra.gmra.mxu0 %vm226_vm3, %v401_v62 }
 0x482   : > { %v994_v63 = vpop.eup %993  ;;  %950 = vmatpush3.msra.mxu0 %v571_v57  ;;  %951 = vmatprep.mubr.msk.f32.mxu0 %vm1006_vm0, %v1005_v0 }
 0x483   : > { %959 = vmatprep.subr.mxu0 %v1005_v0  ;;  %v569_v2 = vmul.f32 %v994_v63, %v988_v52 }
 0x485   : > { %952 = vmatmul.mubr.msk.f32.vlgmr.msra.gmra.mxu0 %vm226_vm3, %v569_v2 }
 0x486   : > { %v996_v3 = vpop.eup %995  ;;  %960 = vmatpush3.msra.mxu0 %v738_v1  ;;  %961 = vmatprep.mubr.msk.f32.mxu0 %vm1006_vm0, %v1005_v0 }
 0x487   : > { %v736_v4 = vmul.f32 %v996_v3, %v990_v54 }
 0x489   : > { %962 = vmatmul.mubr.msk.f32.vlgmr.msra.gmra.mxu0 %vm226_vm3, %v736_v4 }
 0x541   : > { %v475_v5 = vpop.f32.mrf.mxu0 }
 0x542   : > { %814 = vrot.lane.b32.xlu0 %v475_v5, %s1013_s23 }
 0x543   : > { %v943_v6 = vpop.f32.mrf.mxu0 }
 0x545   : > { %v642_v7 = vpop.f32.mrf.mxu0 }
 0x546   : > { %818 = vrot.lane.b32.xlu1 %v642_v7, %s1010_s18 }
 0x547   : > { %v953_v8 = vpop.f32.mrf.mxu0 }
 0x549   : > { %v809_v9 = vpop.f32.mrf.mxu0 }
 0x54a   : > { %822 = vrot.lane.b32.xlu0 %v809_v9, %s1008_s16 }
 0x54b   : > { %v963_v10 = vpop.f32.mrf.mxu0 }
 0x5b4   : > { %v815_v11 = vpop.permute.xlu0 %814 }
 0x5b5   : > { %v825_v0 = vsel %vm148_vm1, %v1093_v24, %v815_v11 }
 0x5b8   : > { %v819_v12 = vpop.permute.xlu1 %818 }
 0x5b9   : > { %v827_v13 = vsel %vm826_vm4, %v825_v0, %v819_v12 }
 0x5bc   : > { %v823_v14 = vpop.permute.xlu0 %822 }
 0x5bd   : > { %v829_v15 = vsel %vm828_vm5, %v827_v13, %v823_v14 }
 0x5be   : > { %831 = vst.msk [vmem:[%s141_s27] sm:$0xff] %vm830_vm6, %v829_v15 }
 0x5bf PF: > { %s12_s9 = sadd.s32 1, %s1003_s9  }
 0x5c0   : > { %p9_p4 = scmp.ge.s32.totalorder %s12_s9, 4  }
 0x5c2   :  { %11 = sbr.rel (!%p9_p4) target bundleno = 1 (0x1), region = 58 }

// kernel: decoder_block_forward.13
= control target key start
LH: loop header
LB: loop body
LE: loop exit
PB: predicated region body
PF: predicated region fallthrough
CT: control target
= control target key end

     0   :  { %vm21_vm0 = vcmask 523264   ;;  %s193_s1 = inlined_call_operand.vmem [shape: f32[64,128], index: 1, kind: input, shape index: {}]   ;;  %s194_s0 = inlined_call_operand.vmem [shape: f32[16,64], index: 0, kind: input, shape index: {}]   ;;  %s195_s2 = inlined_call_operand.vmem [shape: f32[16,128], index: 2, kind: output, shape index: {}]  }
   0x1   :  { %v20_v0 = vld [vmem:[%s193_s1 + $0x38] sm:$0xff]  ;;  %v19_v1 = vld [vmem:[%s193_s1 + $0x30] sm:$0xff]  ;;  %v18_v2 = vld [vmem:[%s193_s1 + $0x28] sm:$0xff] }
   0x2   :  { %121 = vmatprep.subr.mxu0 %v20_v0  ;;  %v11_v3 = vld [vmem:[%s194_s0] sm:$0xff]  ;;  %v16_v5 = vld [vmem:[%s193_s1 + $0x18] sm:$0xff]  ;;  %v15_v6 = vld [vmem:[%s193_s1 + $0x10] sm:$0xff] }
   0x3   :  { %122 = vmatpush3.msra.mxu0 %v20_v0  ;;  %137 = vmatprep.mubr.msk.f32.mxu0 %vm21_vm0, %v11_v3  ;;  %v17_v4 = vld [vmem:[%s193_s1 + $0x20] sm:$0xff]  ;;  %v14_v7 = vld [vmem:[%s193_s1 + $0x8] sm:$0xff] }
   0x4   :  { %123 = vmatprep.subr.mxu0 %v19_v1  ;;  %v13_v8 = vld [vmem:[%s193_s1] sm:$0xff]  ;;  %v12_v9 = vld [vmem:[%s194_s0 + $0x8] sm:$0xff] }
   0x5   :  { %124 = vmatpush3.msra.mxu0 %v19_v1 }
   0x6   :  { %125 = vmatprep.subr.mxu0 %v18_v2 }
   0x7   :  { %126 = vmatpush3.msra.mxu0 %v18_v2 }
   0x8   :  { %127 = vmatprep.subr.mxu0 %v17_v4 }
   0x9   :  { %128 = vmatpush3.msra.mxu0 %v17_v4 }
   0xa   :  { %129 = vmatprep.subr.mxu0 %v16_v5 }
   0xb   :  { %130 = vmatpush3.msra.mxu0 %v16_v5 }
   0xc   :  { %131 = vmatprep.subr.mxu0 %v15_v6 }
   0xd   :  { %132 = vmatpush3.msra.mxu0 %v15_v6 }
   0xe   :  { %133 = vmatprep.subr.mxu0 %v14_v7 }
   0xf   :  { %134 = vmatpush3.msra.mxu0 %v14_v7 }
  0x10   :  { %135 = vmatprep.subr.mxu0 %v13_v8 }
  0x11   :  { %136 = vmatpush3.msra.mxu0 %v13_v8 }
  0x12   :  { %138 = vmatmul.mubr.msk.f32.vlgmr.msra.gmra.mxu0 %vm21_vm0, %v12_v9 }
  0xd2   :  { %v139_v10 = vpop.f32.mrf.mxu0 }
  0xd3   :  { %104 = vst [vmem:[%s195_s2 + $0x8] sm:$0xff] %v139_v10 }
  0xd4   :  { %v94_v11 = vpop.f32.mrf.mxu0 }
  0xd5   :  { %103 = vst [vmem:[%s195_s2] sm:$0xff] %v94_v11 }

// kernel: decoder_block_forward.16
= control target key start
LH: loop header
LB: loop body
LE: loop exit
PB: predicated region body
PF: predicated region fallthrough
CT: control target
= control target key end

     0   :  { %vm22_vm0 = vcmask 523264   ;;  %s309_s0 = inlined_call_operand.vmem [shape: f32[16,64], index: 0, kind: input, shape index: {}]   ;;  %s310_s1 = inlined_call_operand.vmem [shape: f32[64,128], index: 1, kind: input, shape index: {}]   ;;  %s311_s2 = inlined_call_operand.vmem [shape: f32[1,64], index: 2, kind: input, shape index: {}]   ;;  %s312_s3 = inlined_call_operand.vmem [shape: f32[1,64], index: 3, kind: input, shape index: {}]   ;;  %s313_s4 = inlined_call_operand.vmem [shape: f32[1,128], index: 4, kind: input, shape index: {}]   ;;  %s314_s5 = inlined_call_operand.vmem [shape: f32[16,128], index: 5, kind: output, shape index: {}]  }
   0x1   :  { %v20_v0 = vld [vmem:[%s309_s0] sm:$0xff]  ;;  %v21_v1 = vld [vmem:[%s309_s0 + $0x8] sm:$0xff]  ;;  %v89_v14 = vld [vmem:[%s310_s1 + $0x38] sm:$0xff] }
   0x2   :  { %v23_v2 = vsel %vm22_vm0, %v20_v0, 0.0  ;;  %v26_v3 = vsel %vm22_vm0, %v21_v1, 0.0  ;;  %v88_v15 = vld [vmem:[%s310_s1 + $0x30] sm:$0xff]  ;;  %201 = vmatprep.subr.mxu0 %v89_v14  ;;  %v87_v16 = vld [vmem:[%s310_s1 + $0x28] sm:$0xff]  ;;  %v86_v17 = vld [vmem:[%s310_s1 + $0x20] sm:$0xff] }
   0x3   :  { %24 = vadd.xlane.f32.xlu0 %v23_v2  ;;  %202 = vmatpush3.msra.mxu0 %v89_v14  ;;  %v85_v18 = vld [vmem:[%s310_s1 + $0x18] sm:$0xff]  ;;  %v84_v19 = vld [vmem:[%s310_s1 + $0x10] sm:$0xff]  ;;  %v83_v20 = vld [vmem:[%s310_s1 + $0x8] sm:$0xff] }
   0x4   :  { %203 = vmatprep.subr.mxu0 %v88_v15  ;;  %v82_v21 = vld [vmem:[%s310_s1] sm:$0xff] }
   0x5   :  { %204 = vmatpush3.msra.mxu0 %v88_v15  ;;  %v186_v38 = vld [vmem:[%s311_s2] ss:$0 sm:$0xff] }
   0x6   :  { %205 = vmatprep.subr.mxu0 %v87_v16  ;;  %v187_v41 = vld [vmem:[%s312_s3] ss:$0 sm:$0xff] }
   0x7   :  { %27 = vadd.xlane.f32.xlu0 %v26_v3  ;;  %206 = vmatpush3.msra.mxu0 %v87_v16  ;;  %v188_v48 = vld [vmem:[%s313_s4] ss:$0 sm:$0xff] }
   0x8   :  { %207 = vmatprep.subr.mxu0 %v86_v17 }
   0x9   :  { %208 = vmatpush3.msra.mxu0 %v86_v17 }
   0xa   :  { %209 = vmatprep.subr.mxu0 %v85_v18 }
   0xb   :  { %210 = vmatpush3.msra.mxu0 %v85_v18 }
   0xc   :  { %211 = vmatprep.subr.mxu0 %v84_v19 }
   0xd   :  { %212 = vmatpush3.msra.mxu0 %v84_v19 }
   0xe   :  { %213 = vmatprep.subr.mxu0 %v83_v20 }
   0xf   :  { %214 = vmatpush3.msra.mxu0 %v83_v20 }
  0x10   :  { %215 = vmatprep.subr.mxu0 %v82_v21 }
  0x11   :  { %216 = vmatpush3.msra.mxu0 %v82_v21 }
  0x8c   :  { %v25_v4 = vpop.xlane.xlu0 %24 }
  0x8d   :  { %v30_v5 = vmul.f32 0.015625, %v25_v4 }
  0x8f   :  { %v32_v6 = vsub.f32 %v20_v0, %v30_v5 }
  0x90   :  { %v28_v7 = vpop.xlane.xlu0 %27 }
  0x91   :  { %v31_v8 = vmul.f32 0.015625, %v28_v7  ;;  %v34_v9 = vmul.f32 %v32_v6, %v32_v6  ;;  %v51_v39 = vmul.f32 %v186_v38, %v32_v6 }
  0x93   :  { %v33_v10 = vsub.f32 %v21_v1, %v31_v8  ;;  %v36_v11 = vsel %vm22_vm0, %v34_v9, 0.0 }
  0x94   :  { %37 = vadd.xlane.f32.xlu1 %v36_v11 }
  0x95   :  { %v35_v12 = vmul.f32 %v33_v10, %v33_v10  ;;  %v52_v43 = vmul.f32 %v186_v38, %v33_v10 }
  0x97   :  { %v39_v13 = vsel %vm22_vm0, %v35_v12, 0.0 }
  0x98   :  { %40 = vadd.xlane.f32.xlu1 %v39_v13 }
 0x11d   :  { %v38_v22 = vpop.xlane.xlu1 %37 }
 0x11e   :  { %v42_v23 = vmul.f32 0.015873017, %v38_v22 }
 0x120   :  { %220 = vrsqrt.f32 %v42_v23  ;;  %vm55_vm1 = vcmp.eq.f32.partialorder %v42_v23, inf  ;;  %v58_v28 = vand.u32 2147483648, %v42_v23  ;;  %vm57_vm2 = vcmp.eq.f32.partialorder %v42_v23, 0.0 }
 0x121   :  { %v41_v24 = vpop.xlane.xlu1 %40 }
 0x122   :  { %v43_v25 = vmul.f32 0.015873017, %v41_v24 }
 0x124   :  { %222 = vrsqrt.f32 %v43_v25  ;;  %vm62_vm3 = vcmp.eq.f32.partialorder %v43_v25, inf  ;;  %v65_v34 = vand.u32 2147483648, %v43_v25  ;;  %vm64_vm4 = vcmp.eq.f32.partialorder %v43_v25, 0.0 }
 0x12d   :  { %v221_v26 = vpop.eup %220 }
 0x12e   :  { %v54_v27 = vmul.f32 %v221_v26, %v42_v23 }
 0x130   :  { %v56_v29 = vsel %vm55_vm1, %v42_v23, %v54_v27 }
 0x131   :  { %v223_v30 = vpop.eup %222  ;;  %v59_v31 = vsel %vm57_vm2, %v58_v28, %v56_v29 }
 0x132   :  { %v61_v32 = vmul.f32 %v223_v30, %v43_v25  ;;  %v67_v33 = vadd.f32 1e-06, %v59_v31 }
 0x134   :  { %v63_v35 = vsel %vm62_vm3, %v43_v25, %v61_v32  ;;  %224 = vrcp.f32 %v67_v33 }
 0x135   :  { %v66_v36 = vsel %vm64_vm4, %v65_v34, %v63_v35 }
 0x136   :  { %v68_v37 = vadd.f32 1e-06, %v66_v36 }
 0x138   :  { %226 = vrcp.f32 %v68_v37 }
 0x141   :  { %v225_v40 = vpop.eup %224 }
 0x142   :  { %v70_v42 = vmul.f32 %v225_v40, %v51_v39 }
 0x144   :  { %v80_v44 = vadd.f32 %v187_v41, %v70_v42 }
 0x145   :  { %v227_v45 = vpop.eup %226 }
 0x146   :  { %v72_v46 = vmul.f32 %v227_v45, %v52_v43  ;;  %217 = vmatprep.mubr.msk.f32.mxu0 %vm22_vm0, %v80_v44 }
 0x148   :  { %v81_v47 = vadd.f32 %v187_v41, %v72_v46 }
 0x14a   :  { %218 = vmatmul.mubr.msk.f32.vlgmr.msra.gmra.mxu0 %vm22_vm0, %v81_v47 }
 0x20a   :  { %v219_v49 = vpop.f32.mrf.mxu0 }
 0x20b   :  { %v175_v50 = vadd.f32 %v219_v49, %v188_v48 }
 0x20c   :  { %v169_v51 = vpop.f32.mrf.mxu0 }
 0x20d   :  { %v179_v52 = vmax.f32 %v175_v50, 0.0  ;;  %v170_v53 = vadd.f32 %v188_v48, %v169_v51 }
 0x20f   :  { %181 = vst [vmem:[%s314_s5 + $0x8] sm:$0xff] %v179_v52  ;;  %v178_v54 = vmax.f32 %v170_v53, 0.0 }
 0x211   :  { %180 = vst [vmem:[%s314_s5] sm:$0xff] %v178_v54 }

// kernel: decoder_block_forward.14
= control target key start
LH: loop header
LB: loop body
LE: loop exit
PB: predicated region body
PF: predicated region fallthrough
CT: control target
= control target key end

     0   :  { %s1118_s12 = smov 0   ;;  %s1217_s0 = inlined_call_operand.vmem [shape: f32[2,8,64], index: 0, kind: input, shape index: {}]   ;;  %s1218_s1 = inlined_call_operand.vmem [shape: f32[2,8,128], index: 1, kind: input, shape index: {}]   ;;  %s1219_s2 = inlined_call_operand.vmem [shape: s32[2,1,1,8], index: 2, kind: input, shape index: {}]   ;;  %s1220_s3 = inlined_call_operand.vmem [shape: f32[2,8,64], index: 3, kind: output, shape index: {}]  }
   0x1 LB: > { %s968_s13 = sadd.s32 4294967295, %s1086_s12   ;;  %p972_p0 = scmp.ge.s32.totalorder %s1086_s12, 1  ;;  %s1086_s12 = sphi %s1118_s12, %s13_s12  }
   0x2   : > { %p153_p1 = scmp.lt.s32.totalorder %s1086_s12, 3 }
   0x4   : > { %p154_p2 = pnand %p972_p0, %p153_p1 }
   0x5   : > { %p182_p3 = scmp.lt.s32.totalorder (!%p154_p2), %s968_s13, 1  ;;  %s1091_s24 = smov (!%p154_p2), 64  }
   0x6   : > { %157 = sbr.rel (%p154_p2) target bundleno = 1356 (0x54c), region = 32  ;;  %s1092_s25 = smov (!%p154_p2), 112  }
   0x7   : > { %s1093_s26 = smov (!%p154_p2), 96   ;;  %s1094_s27 = smov (!%p154_p2), 80  }
   0x8   : > { %s1095_s28 = smov (!%p154_p2), 48   ;;  %s1096_s29 = smov (!%p154_p2), 16  }
   0x9   : > { %s1097_s30 = smov (!%p154_p2), 32  }
   0xb   : > { %v1088_v0 = vmov 0.0   ;;  %vm1089_vm0 = vmmov 0   ;;  %s1222_s13 = smov (!%p182_p3, %s968_s13), 1  ;;  %vm200_vm1 = vcmask 130048   ;;  %v280_v3 = vlaneseq }
   0xc   : > { %1006 = vmatprep.subr.mxu0 %v1088_v0  ;;  %1008 = vmatprep.mubr.msk.f32.mxu0 %vm1089_vm0, %v1088_v0  ;;  %s1132_s14 = sshll.u32 %s1222_s13, 3  ;;  %s192_s23 = scalar_lea.vmem %s1219_s2, %s1222_s13  ;;  %v1090_v7 = vmov 0   ;;  %vm286_vm4 = vcmask 64512   ;;  %vm888_vm5 = vcmask 261120   ;;  %vm890_vm6 = vcmask 392192  }
   0xd   : > { %1011 = vmatprep.subr.mxu1 %v1088_v0  ;;  %1013 = vmatprep.mubr.msk.f32.mxu1 %vm1089_vm0, %v1088_v0  ;;  %s189_s17 = scalar_lea.vmem %s1218_s1, %s1132_s14  ;;  %s185_s20 = scalar_lea.vmem %s1217_s0, %s1132_s14  ;;  %v199_v4 = vld [vmem:[%s192_s23] sm:$0x1]  ;;  %v281_v5 = vshrl.u32 %v280_v3, 7  ;;  %vm892_vm7 = vcmask 523264  }
   0xe   : > { %v1142_v1 = vld [vmem:[%s189_s17] sm:$0xff]  ;;  %vm278_vm2 = vcmp.eq.s32.totalorder %v199_v4, 0  ;;  %s196_s6 = scalar_lea.vmem %s1220_s3, %s1132_s14 }
   0xf   : > { %1007 = vmatpush3.xpose.msk.msra.mxu0 %vm200_vm1, %v1142_v1  ;;  %v197_v2 = vld [vmem:[%s185_s20] sm:$0xff]  ;;  %v282_v6 = vsub.s32 0, %v281_v5  ;;  %v279_v8 = vsel %vm278_vm2, 1, %v1090_v7  ;;  %298 = vrot.lane.b32.xlu1 %v1142_v1, %s1091_s24 }
  0x10   : > { %1021 = vmatprep.subr.mxu0 %v1088_v0 }
  0x11   : > { %v1153_v9 = vrot.slane %v279_v8, %v282_v6 }
  0x12   : > { %1009 = vmatmul.mubr.msk.f32.vlgmr.msra.gmra.mxu0 %vm200_vm1, %v197_v2 }
  0x13   : > { %1023 = vmatprep.mubr.msk.f32.mxu0 %vm1089_vm0, %v1088_v0  ;;  %vm284_vm3 = vcmp.eq.s32.totalorder %v1153_v9, 1  ;;  %376 = vrot.lane.b32.xlu1 %v1142_v1, %s1092_s25 }
  0x17   : > { %543 = vrot.lane.b32.xlu1 %v1142_v1, %s1093_s26 }
  0x1b   : > { %541 = vrot.lane.b32.xlu1 %v197_v2, %s1093_s26 }
  0x1f   : > { %710 = vrot.lane.b32.xlu1 %v1142_v1, %s1094_s27 }
  0x23   : > { %708 = vrot.lane.b32.xlu1 %v197_v2, %s1094_s27 }
  0x81   : > { %v299_v20 = vpop.permute.xlu1 %298 }
  0x82   : > { %1012 = vmatpush3.msra.mxu1 %v299_v20 }
  0x83   : > { %1016 = vmatprep.subr.mxu1 %v1088_v0 }
  0x85   : > { %v377_v22 = vpop.permute.xlu1 %376 }
  0x89   : > { %v544_v23 = vpop.permute.xlu1 %543 }
  0x8d   : > { %v542_v25 = vpop.permute.xlu1 %541 }
  0x91   : > { %v711_v28 = vpop.permute.xlu1 %710 }
  0x95   : > { %v709_v29 = vpop.permute.xlu1 %708 }
  0xd2   : > { %v273_v10 = vpop.f32.mrf.mxu0 }
  0xd3   : > { %v277_v11 = vmul.f32 0.25, %v273_v10 }
  0xd4   : > { %v1010_v12 = vpop.f32.mrf.mxu0 }
  0xd5   : > { %v285_v13 = vsel %vm284_vm3, -1e+09, %v277_v11 }
  0xd6   : > { %v287_v14 = vsel %vm286_vm4, %v285_v13, -inf }
  0xd7   : > { %288 = vmax.xlane.f32.xlu0 %v287_v14 }
 0x160   : > { %v289_v15 = vpop.xlane.xlu0 %288 }
 0x161   : > { %v290_v16 = vsub.f32 %v285_v13, %v289_v15 }
 0x163   : > { %v291_v17 = vmul.f32 1.442695, %v290_v16 }
 0x165   : > { %1064 = vpow2.f32 %v291_v17 }
 0x172   : > { %v1065_v18 = vpop.eup %1064 }
 0x173   : > { %v293_v19 = vsel %vm286_vm4, %v1065_v18, 0.0 }
 0x174   : > { %294 = vadd.xlane.f32.xlu0 %v293_v19 }
 0x18a   : > { %374 = vrot.lane.b32.xlu0 %v197_v2, %s1092_s25 }
 0x1fd   : > { %v295_v21 = vpop.xlane.xlu0 %294 }
 0x1fe   : > { %1066 = vrcp.f32 %v295_v21 }
 0x201   : > { %v375_v27 = vpop.permute.xlu0 %374 }
 0x20b   : > { %v1067_v24 = vpop.eup %1066 }
 0x20c   : > { %v297_v26 = vmul.f32 %v1067_v24, %v1065_v18 }
 0x20e   : > { %1014 = vmatmul.mubr.msk.f32.vlgmr.msra.gmra.mxu1 %vm286_vm4, %v297_v26 }
 0x20f   : > { %1017 = vmatpush3.xpose.msk.msra.mxu1 %vm200_vm1, %v377_v22  ;;  %1018 = vmatprep.mubr.msk.f32.mxu1 %vm1089_vm0, %v1088_v0 }
 0x210   : > { %1026 = vmatprep.subr.mxu1 %v1088_v0 }
 0x212   : > { %1019 = vmatmul.mubr.msk.f32.vlgmr.msra.gmra.mxu1 %vm200_vm1, %v375_v27 }
 0x213   : > { %1027 = vmatpush3.xpose.msk.msra.mxu1 %vm200_vm1, %v544_v23  ;;  %1028 = vmatprep.mubr.msk.f32.mxu1 %vm1089_vm0, %v1088_v0 }
 0x214   : > { %1036 = vmatprep.subr.mxu1 %v1088_v0 }
 0x216   : > { %1029 = vmatmul.mubr.msk.f32.vlgmr.msra.gmra.mxu1 %vm200_vm1, %v542_v25 }
 0x217   : > { %1037 = vmatpush3.xpose.msk.msra.mxu1 %vm200_vm1, %v711_v28  ;;  %1038 = vmatprep.mubr.msk.f32.mxu1 %vm1089_vm0, %v1088_v0 }
 0x21a   : > { %1039 = vmatmul.mubr.msk.f32.vlgmr.msra.gmra.mxu1 %vm200_vm1, %v709_v29 }
 0x2ce   : > { %v1180_v30 = vpop.f32.mrf.mxu1 }
 0x2d0   : > { %v1015_v31 = vpop.f32.mrf.mxu1 }
 0x2d2   : > { %v448_v32 = vpop.f32.mrf.mxu1 }
 0x2d3   : > { %v452_v33 = vmul.f32 0.25, %v448_v32 }
 0x2d4   : > { %v1020_v34 = vpop.f32.mrf.mxu1 }
 0x2d5   : > { %v453_v35 = vsel %vm284_vm3, -1e+09, %v452_v33 }
 0x2d6   : > { %v615_v36 = vpop.f32.mrf.mxu1  ;;  %v454_v37 = vsel %vm286_vm4, %v453_v35, -inf }
 0x2d7   : > { %v619_v38 = vmul.f32 0.25, %v615_v36  ;;  %455 = vmax.xlane.f32.xlu1 %v454_v37 }
 0x2d8   : > { %v1030_v39 = vpop.f32.mrf.mxu1 }
 0x2d9   : > { %v620_v40 = vsel %vm284_vm3, -1e+09, %v619_v38 }
 0x2da   : > { %v782_v41 = vpop.f32.mrf.mxu1  ;;  %v621_v42 = vsel %vm286_vm4, %v620_v40, -inf }
 0x2db   : > { %v786_v43 = vmul.f32 0.25, %v782_v41  ;;  %622 = vmax.xlane.f32.xlu0 %v621_v42 }
 0x2dc   : > { %v1040_v44 = vpop.f32.mrf.mxu1 }
 0x2dd   : > { %v787_v45 = vsel %vm284_vm3, -1e+09, %v786_v43 }
 0x2de   : > { %v788_v46 = vsel %vm286_vm4, %v787_v45, -inf }
 0x2df   : > { %789 = vmax.xlane.f32.xlu1 %v788_v46 }
 0x2f0   : > { %465 = vrot.lane.b32.xlu1 %v1142_v1, %s1095_s28 }
 0x360   : > { %v456_v47 = vpop.xlane.xlu1 %455 }
 0x361   : > { %v457_v48 = vsub.f32 %v453_v35, %v456_v47 }
 0x363   : > { %v458_v49 = vmul.f32 1.442695, %v457_v48 }
 0x364   : > { %v623_v50 = vpop.xlane.xlu0 %622 }
 0x365   : > { %1068 = vpow2.f32 %v458_v49  ;;  %v624_v51 = vsub.f32 %v620_v40, %v623_v50 }
 0x367   : > { %v625_v52 = vmul.f32 1.442695, %v624_v51 }
 0x368   : > { %v790_v53 = vpop.xlane.xlu1 %789 }
 0x369   : > { %1070 = vpow2.f32 %v625_v52  ;;  %v791_v54 = vsub.f32 %v787_v45, %v790_v53 }
 0x36b   : > { %v792_v55 = vmul.f32 1.442695, %v791_v54 }
 0x36c   : > { %v466_v56 = vpop.permute.xlu1 %465 }
 0x36d   : > { %1072 = vpow2.f32 %v792_v55  ;;  %1022 = vmatpush3.msra.mxu0 %v466_v56 }
 0x36e   : > { %1031 = vmatprep.subr.mxu0 %v1088_v0 }
 0x372   : > { %v1069_v57 = vpop.eup %1068 }
 0x373   : > { %v460_v58 = vsel %vm286_vm4, %v1069_v57, 0.0 }
 0x374   : > { %461 = vadd.xlane.f32.xlu0 %v460_v58 }
 0x376   : > { %v1071_v59 = vpop.eup %1070 }
 0x377   : > { %v627_v60 = vsel %vm286_vm4, %v1071_v59, 0.0 }
 0x378   : > { %628 = vadd.xlane.f32.xlu1 %v627_v60 }
 0x37a   : > { %v1073_v61 = vpop.eup %1072 }
 0x37b   : > { %v794_v62 = vsel %vm286_vm4, %v1073_v61, 0.0 }
 0x37c   : > { %795 = vadd.xlane.f32.xlu0 %v794_v62 }
 0x389   : > { %799 = vrot.lane.b32.xlu1 %v1142_v1, %s1096_s29 }
 0x392   : > { %632 = vrot.lane.b32.xlu0 %v1142_v1, %s1097_s30 }
 0x3fd   : > { %v462_v63 = vpop.xlane.xlu0 %461 }
 0x3fe   : > { %1074 = vrcp.f32 %v462_v63 }
 0x401   : > { %v629_v2 = vpop.xlane.xlu1 %628 }
 0x402   : > { %1076 = vrcp.f32 %v629_v2 }
 0x405   : > { %v796_v3 = vpop.xlane.xlu0 %795  ;;  %v800_v8 = vpop.permute.xlu1 %799 }
 0x406   : > { %1078 = vrcp.f32 %v796_v3 }
 0x409   : > { %v633_v5 = vpop.permute.xlu0 %632 }
 0x40b   : > { %v1075_v4 = vpop.eup %1074 }
 0x40c   : > { %v464_v6 = vmul.f32 %v1075_v4, %v1069_v57 }
 0x40e   : > { %1024 = vmatmul.mubr.msk.f32.vlgmr.msra.gmra.mxu0 %vm286_vm4, %v464_v6 }
 0x40f   : > { %v1077_v7 = vpop.eup %1076  ;;  %1032 = vmatpush3.msra.mxu0 %v633_v5  ;;  %1033 = vmatprep.mubr.msk.f32.mxu0 %vm1089_vm0, %v1088_v0 }
 0x410   : > { %1041 = vmatprep.subr.mxu0 %v1088_v0  ;;  %v631_v1 = vmul.f32 %v1077_v7, %v1071_v59 }
 0x412   : > { %1034 = vmatmul.mubr.msk.f32.vlgmr.msra.gmra.mxu0 %vm286_vm4, %v631_v1 }
 0x413   : > { %v1079_v9 = vpop.eup %1078  ;;  %1042 = vmatpush3.msra.mxu0 %v800_v8  ;;  %1043 = vmatprep.mubr.msk.f32.mxu0 %vm1089_vm0, %v1088_v0 }
 0x414   : > { %v798_v10 = vmul.f32 %v1079_v9, %v1073_v61 }
 0x416   : > { %1044 = vmatmul.mubr.msk.f32.vlgmr.msra.gmra.mxu0 %vm286_vm4, %v798_v10 }
 0x4ce   : > { %v537_v11 = vpop.f32.mrf.mxu0 }
 0x4cf   : > { %876 = vrot.lane.b32.xlu1 %v537_v11, %s1096_s29 }
 0x4d0   : > { %v1025_v12 = vpop.f32.mrf.mxu0 }
 0x4d2   : > { %v704_v13 = vpop.f32.mrf.mxu0 }
 0x4d3   : > { %880 = vrot.lane.b32.xlu0 %v704_v13, %s1097_s30 }
 0x4d4   : > { %v1035_v14 = vpop.f32.mrf.mxu0 }
 0x4d6   : > { %v871_v15 = vpop.f32.mrf.mxu0 }
 0x4d7   : > { %884 = vrot.lane.b32.xlu1 %v871_v15, %s1095_s28 }
 0x4d8   : > { %v1045_v16 = vpop.f32.mrf.mxu0 }
 0x541   : > { %v877_v17 = vpop.permute.xlu1 %876 }
 0x542   : > { %v887_v0 = vsel %vm200_vm1, %v1180_v30, %v877_v17 }
 0x545   : > { %v881_v18 = vpop.permute.xlu0 %880 }
 0x546   : > { %v889_v19 = vsel %vm888_vm5, %v887_v0, %v881_v18 }
 0x549   : > { %v885_v20 = vpop.permute.xlu1 %884 }
 0x54a   : > { %v891_v21 = vsel %vm890_vm6, %v889_v19, %v885_v20 }
 0x54b   : > { %893 = vst.msk [vmem:[%s196_s6] sm:$0xff] %vm892_vm7, %v891_v21 }
 0x54c PF: > { %s13_s12 = sadd.s32 1, %s1086_s12  }
 0x54d   : > { %p10_p4 = scmp.ge.s32.totalorder %s13_s12, 4  }
 0x54f   :  { %12 = sbr.rel (!%p10_p4) target bundleno = 1 (0x1), region = 68 }

// kernel: decoder_block_forward.17
= control target key start
LH: loop header
LB: loop body
LE: loop exit
PB: predicated region body
PF: predicated region fallthrough
CT: control target
= control target key end

     0   :  { %s314_s0 = inlined_call_operand.vmem [shape: f32[16,128], index: 0, kind: input, shape index: {}]   ;;  %s315_s1 = inlined_call_operand.vmem [shape: f32[128,64], index: 1, kind: input, shape index: {}]   ;;  %s316_s2 = inlined_call_operand.vmem [shape: f32[1,64], index: 2, kind: input, shape index: {}]   ;;  %s317_s3 = inlined_call_operand.vmem [shape: f32[16,64], index: 3, kind: input, shape index: {}]   ;;  %s318_s4 = inlined_call_operand.hbm [shape: f32[16,64], index: 4, kind: output, shape index: {}]  }
   0x1   :  { %v35_v0 = vld [vmem:[%s315_s1 + $0x78] sm:$0xff]  ;;  %v34_v1 = vld [vmem:[%s315_s1 + $0x70] sm:$0xff]  ;;  %v33_v2 = vld [vmem:[%s315_s1 + $0x68] sm:$0xff] }
   0x2   :  { %160 = vmatprep.subr.mxu0 %v35_v0  ;;  %v32_v3 = vld [vmem:[%s315_s1 + $0x60] sm:$0xff]  ;;  %v31_v5 = vld [vmem:[%s315_s1 + $0x58] sm:$0xff] }
   0x3   :  { %161 = vmatpush3.msra.mxu0 %v35_v0  ;;  %v18_v4 = vld [vmem:[%s314_s0] sm:$0xff] }
   0x4   :  { %162 = vmatprep.subr.mxu0 %v34_v1  ;;  %192 = vmatprep.mubr.f32.mxu0 %v18_v4 }
   0x5   :  { %163 = vmatpush3.msra.mxu0 %v34_v1 }
   0x6   :  { %164 = vmatprep.subr.mxu0 %v33_v2 }
   0x7   :  { %165 = vmatpush3.msra.mxu0 %v33_v2 }
   0x8   :  { %9 = vsyncpa [#allocation3], 0  ;;  %166 = vmatprep.subr.mxu0 %v32_v3  ;;  %v30_v6 = vld [vmem:[%s315_s1 + $0x50] sm:$0xff]  ;;  %v29_v7 = vld [vmem:[%s315_s1 + $0x48] sm:$0xff]  ;;  %vm122_vm0 = vcmask 523264  }
   0x9   :  { %167 = vmatpush3.msra.mxu0 %v32_v3  ;;  %v28_v8 = vld [vmem:[%s315_s1 + $0x40] sm:$0xff]  ;;  %v27_v9 = vld [vmem:[%s315_s1 + $0x38] sm:$0xff]  ;;  %v26_v10 = vld [vmem:[%s315_s1 + $0x30] sm:$0xff] }
   0xa   :  { %168 = vmatprep.subr.mxu0 %v31_v5  ;;  %v25_v11 = vld [vmem:[%s315_s1 + $0x28] sm:$0xff]  ;;  %v24_v12 = vld [vmem:[%s315_s1 + $0x20] sm:$0xff]  ;;  %v23_v13 = vld [vmem:[%s315_s1 + $0x18] sm:$0xff] }
   0xb   :  { %169 = vmatpush3.msra.mxu0 %v31_v5  ;;  %v22_v14 = vld [vmem:[%s315_s1 + $0x10] sm:$0xff]  ;;  %v21_v15 = vld [vmem:[%s315_s1 + $0x8] sm:$0xff]  ;;  %v20_v16 = vld [vmem:[%s315_s1] sm:$0xff]  ;;  %s220_s1 = smov [#allocation2]  }
   0xc   :  { %170 = vmatprep.subr.mxu0 %v30_v6  ;;  %v19_v17 = vld [vmem:[%s314_s0 + $0x8] sm:$0xff]  ;;  %v141_v18 = vld [vmem:[%s316_s2] ss:$0 sm:$0xff]  ;;  %s130_s29 = sshll.u32 %s220_s1, 4  ;;  %s131_s29 = int_to_ptr.vmem [resolvable:$true] %s130_s29 }
   0xd   :  { %171 = vmatpush3.msra.mxu0 %v30_v6  ;;  %v119_v20 = vld [vmem:[%s317_s3 + $0x8] sm:$0xff]  ;;  %v118_v23 = vld [vmem:[%s317_s3] sm:$0xff]  ;;  %s198_s0 = scalar_lea.vmem %s131_s29, 256  ;;  %p203_p1 = scmp.lt.s32.totalorder %s131_s29, %s131_s29 }
   0xe   :  { %172 = vmatprep.subr.mxu0 %v29_v7  ;;  %p199_p0 = scmp.ne.s32.totalorder %s131_s29, %s198_s0  ;;  %p204_p2 = scmp.lt.s32.totalorder %s198_s0, %s198_s0 }
   0xf   :  { %173 = vmatpush3.msra.mxu0 %v29_v7 }
  0x10   :  { %174 = vmatprep.subr.mxu0 %v28_v8  ;;  %p205_p3 = por %p204_p2, %p203_p1 }
  0x11   :  { %175 = vmatpush3.msra.mxu0 %v28_v8 }
  0x12   :  { %176 = vmatprep.subr.mxu0 %v27_v9  ;;  %p206_p4 = pnand %p205_p3, %p199_p0 }
  0x13   :  { %177 = vmatpush3.msra.mxu0 %v27_v9 }
  0x14   :  { %178 = vmatprep.subr.mxu0 %v26_v10 }
  0x15   :  { %179 = vmatpush3.msra.mxu0 %v26_v10 }
  0x16   :  { %180 = vmatprep.subr.mxu0 %v25_v11 }
  0x17   :  { %181 = vmatpush3.msra.mxu0 %v25_v11 }
  0x18   :  { %182 = vmatprep.subr.mxu0 %v24_v12 }
  0x19   :  { %183 = vmatpush3.msra.mxu0 %v24_v12 }
  0x1a   :  { %184 = vmatprep.subr.mxu0 %v23_v13 }
  0x1b   :  { %185 = vmatpush3.msra.mxu0 %v23_v13 }
  0x1c   :  { %186 = vmatprep.subr.mxu0 %v22_v14 }
  0x1d   :  { %187 = vmatpush3.msra.mxu0 %v22_v14 }
  0x1e   :  { %188 = vmatprep.subr.mxu0 %v21_v15 }
  0x1f   :  { %189 = vmatpush3.msra.mxu0 %v21_v15 }
  0x20   :  { %190 = vmatprep.subr.mxu0 %v20_v16 }
  0x21   :  { %191 = vmatpush3.msra.mxu0 %v20_v16 }
  0x22   :  { %193 = vmatmul.mubr.f32.vlgmr.msra.gmra.mxu0 %v19_v17 }
  0xe2   :  { %v194_v19 = vpop.f32.mrf.mxu0 }
  0xe3   :  { %v115_v21 = vadd.f32 %v194_v19, %v141_v18 }
  0xe4   :  { %v109_v22 = vpop.f32.mrf.mxu0 }
  0xe5   :  { %v121_v24 = vadd.f32 %v119_v20, %v115_v21  ;;  %v110_v25 = vadd.f32 %v141_v18, %v109_v22 }
  0xe7   :  { %124 = vst.msk [vmem:[#allocation2 + $0x8] sm:$0xff] %vm122_vm0, %v121_v24  ;;  %v120_v26 = vadd.f32 %v118_v23, %v110_v25 }
  0xe9   :  { %123 = vst.msk [vmem:[#allocation2] sm:$0xff] %vm122_vm0, %v120_v26 }
  0xea   :  { %209 = shalt.err (!%p206_p4)
}
  0xeb   :  { %s221_s2 = smov 128   ;;  %s222_s6 = smov 8  }
  0xec   :  { %136 = dma.vmem_to_hbm [thread:$0]  %s131_s29, 256, %s318_s4, [#allocation3], %s221_s2, %s221_s2, %s222_s6  }
  0xed   :  { %218 = dma.done.wait [#allocation3], 256  }
  0xee   :  { %219 = vsyncadd [#allocation3], 4294967040 }
  0xef   :  { %140 = vsyncpa [#allocation3], 1 }

</bundles_post_ra>
